<compile_context>
chip_gen: v6e
topology: v6e:2x2x1
jax: 0.10.0
libtpu: 0.0.40
codegen_flags: <defaults>
</compile_context>

<pallas_src>
import functools

import jax
import jax.numpy as jnp
from jax.experimental import pallas as pl
from jax.experimental.pallas import tpu as pltpu


def _upsample_kernel(x_ref, w_ref, s_ref, o_ref, *, band_h, width, c_in, n_feat):
    """One (image, row-band) step of Conv2d(3x3, pad 1, no bias) + PixelShuffle(4).

    x_ref: (H+2, W+2, Cin)        zero-padded NHWC image (batch dim squeezed)
    w_ref: (9*Cin, 16*n_feat)     conv taps; rows (kh, kw, ci), cols (rh, rw, c)
    s_ref: (4W, 4W)               0/1 lane permutation (rw*W + w) -> (4w + rw)
    o_ref: (n_feat, band_h, 16W)  pixel-shuffled NCHW band, flat last dim =
                                  (rh, 4w + rw)  -> free reshape in the wrapper
    """
    r = pl.program_id(1)
    cout = 16 * n_feat
    w4 = 4 * width

    # Halo band for this step (band_h + 2 rows of the padded image), widened to
    # f32 once so every following relayout/dot is plain f32.
    band = x_ref[pl.ds(r * band_h, band_h + 2), :, :].astype(jnp.float32)
    wmat = w_ref[...].astype(jnp.float32)
    perm = s_ref[...]

    # ---- 3x3 conv as 9 accumulating MXU dots (in-kernel im2col) -------------
    acc = jnp.zeros((band_h * width, cout), jnp.float32)
    for kh in range(3):
        for kw in range(3):
            tap = band[kh:kh + band_h, kw:kw + width, :]      # (bh, W, Cin)
            tap = tap.reshape(band_h * width, c_in)           # rows (h, w); W % 8 == 0
            k = kh * 3 + kw
            acc = acc + jnp.dot(tap, wmat[k * c_in:(k + 1) * c_in, :],
                                preferred_element_type=jnp.float32)

    # ---- PixelShuffle(4) rearrangement, entirely in VMEM --------------------
    # acc rows are (h, w), cols are (rh, rw, c).  Per image row a 2-D transpose
    # puts channels on rows / w on lanes; a small permutation matmul then
    # interleaves (rw, w) -> 4w + rw along the lane dim.
    rbt = [acc[h * width:(h + 1) * width, :].T for h in range(band_h)]  # (Cout, W)

    row_pieces = [[None] * 4 for _ in range(band_h)]
    for rh in range(4):
        blocks = []
        for rw in range(4):
            s = rh * 4 + rw
            blocks.append(jnp.concatenate(
                [rbt[h][s * n_feat:(s + 1) * n_feat, :] for h in range(band_h)],
                axis=0))                                       # (bh*C, W), rows (h, c)
        big = jnp.concatenate(blocks, axis=1)                  # (bh*C, 4W), lanes (rw, w)
        spread = jnp.dot(big, perm,
                         preferred_element_type=jnp.float32)   # lanes -> (4w + rw)
        for h in range(band_h):
            row_pieces[h][rh] = spread[h * n_feat:(h + 1) * n_feat, :]   # (C, 4W)

    for h in range(band_h):
        row = jnp.concatenate(row_pieces[h], axis=1)           # (C, 16W) = (rh, 4w+rw)
        o_ref[:, h, :] = row.astype(o_ref.dtype)


def upsample_forward(x_nchw, weight_oihw, *, compute_dtype=None):
    """Forward of Upsample: Conv2d(C, 16C, 3, 1, 1, bias=False) + PixelShuffle(4).

    x_nchw:      (B, n_feat, H, W)
    weight_oihw: (16*n_feat, n_feat, 3, 3)   (PyTorch layout)
    returns:     (B, n_feat, 4H, 4W)
    """
    B, c_in, H, W = x_nchw.shape
    cout = weight_oihw.shape[0]
    n_feat = cout // 16
    assert cout == 16 * n_feat
    assert W % 8 == 0, "lane-safe tap reshape requires W % 8 == 0"
    band_h = 8 if H % 8 == 0 else H          # rows per grid step (out band = 4*band_h rows)
    n_bands = H // band_h
    K = 9 * c_in

    # NHWC + zero "same" padding (tiny: 1/16 of the output tensor).
    x_nhwc = jnp.transpose(x_nchw, (0, 2, 3, 1))
    x_pad = jnp.pad(x_nhwc, ((0, 0), (1, 1), (1, 1), (0, 0)))

    # (Cout, Cin, 3, 3) -> (9*Cin, Cout), rows (kh, kw, ci).  Columns reordered
    # from PyTorch co = c*16 + rh*4 + rw to (rh*4+rw)*C + c so the kernel can
    # take contiguous per-(rh, rw) column slices.
    w_mat = jnp.transpose(weight_oihw, (2, 3, 1, 0)).reshape(K, cout)
    w_mat = w_mat.reshape(K, n_feat, 16).transpose(0, 2, 1).reshape(K, cout)

    # 0/1 lane permutation (rw*W + w) -> (4w + rw), applied via one MXU dot.
    idx = jnp.arange(4 * W)
    perm = jax.nn.one_hot(4 * (idx % W) + idx // W, 4 * W, dtype=jnp.float32)

    if compute_dtype is not None:     # bf16 HBM operands; kernel widens to f32
        x_pad = x_pad.astype(compute_dtype)
        w_mat = w_mat.astype(compute_dtype)

    kernel = functools.partial(_upsample_kernel, band_h=band_h, width=W,
                               c_in=c_in, n_feat=n_feat)

    conv_flops = 2 * B * H * W * K * cout
    shuffle_flops = B * n_bands * 4 * 2 * (band_h * n_feat) * (4 * W) * (4 * W)
    bytes_accessed = (x_pad.size * x_pad.dtype.itemsize
                      + w_mat.size * w_mat.dtype.itemsize
                      + perm.size * 4
                      + B * n_feat * H * 16 * W * x_nchw.dtype.itemsize)

    out = pl.pallas_call(
        kernel,
        out_shape=jax.ShapeDtypeStruct((B, n_feat, H, 16 * W), x_nchw.dtype),
        grid=(B, n_bands),
        in_specs=[
            # Full padded image; constant block index across bands -> DMAed
            # once per image and kept VMEM-resident while its bands run.
            pl.BlockSpec((None, H + 2, W + 2, c_in), lambda b, r: (b, 0, 0, 0)),
            # Conv weight: resident across the whole grid.
            pl.BlockSpec((K, cout), lambda b, r: (0, 0)),
            # Lane-permutation matrix: resident across the whole grid.
            pl.BlockSpec((4 * W, 4 * W), lambda b, r: (0, 0)),
        ],
        out_specs=pl.BlockSpec((None, n_feat, band_h, 16 * W),
                               lambda b, r: (b, 0, r, 0)),
        compiler_params=pltpu.CompilerParams(
            dimension_semantics=("parallel", "arbitrary"),
            vmem_limit_bytes=64 * 1024 * 1024),
        cost_estimate=pl.CostEstimate(flops=int(conv_flops + shuffle_flops),
                                      transcendentals=0,
                                      bytes_accessed=int(bytes_accessed)),
    )(x_pad, w_mat, perm)

    # Free reshape (contiguous dim merges only): (B, C, H, (rh, 4w+rw)) -> (B, C, 4H, 4W)
    return out.reshape(B, n_feat, 4 * H, 4 * W)


def _pixel_shuffle_ref(x_nchw, r):
    """torch.nn.PixelShuffle semantics (reference only)."""
    B, crr, H, W = x_nchw.shape
    C = crr // (r * r)
    x = x_nchw.reshape(B, C, r, r, H, W)
    x = x.transpose(0, 1, 4, 2, 5, 3)
    return x.reshape(B, C, H * r, W * r)


if __name__ == "__main__":
    key = jax.random.PRNGKey(0)
    k_x, k_w = jax.random.split(key)

    n_feat = 4
    B, H, W = 2, 16, 16
    x = jax.random.normal(k_x, (B, n_feat, H, W), dtype=jnp.float32)

    # Deterministic conv weight (PyTorch layout (out_ch, in_ch, kh, kw)), no bias.
    cout = n_feat * 16
    fan_in = n_feat * 3 * 3
    bound = 1.0 / (fan_in ** 0.5)
    weight = jax.random.uniform(
        k_w, (cout, n_feat, 3, 3), dtype=jnp.float32, minval=-bound, maxval=bound)

    out = jax.jit(upsample_forward)(x, weight)
    out = jax.block_until_ready(out)
    assert out.shape == (B, n_feat, 4 * H, 4 * W), out.shape

    # Reference: XLA conv + PixelShuffle.
    y_ref = jax.lax.conv_general_dilated(
        x, weight, window_strides=(1, 1), padding="SAME",
        dimension_numbers=("NCHW", "OIHW", "NCHW"))
    ref = _pixel_shuffle_ref(y_ref, 4)
    assert jnp.allclose(out, ref, atol=1e-4, rtol=1e-4), float(
        jnp.max(jnp.abs(out - ref)))

    # bf16 HBM-operand path (recommended on v6e/v7x for the mem-bound reads);
    # accumulation stays f32, so only input-rounding error -> loose tolerance.
    out_bf16 = jax.jit(
        lambda a, b: upsample_forward(a, b, compute_dtype=jnp.bfloat16))(x, weight)
    out_bf16 = jax.block_until_ready(out_bf16)
    assert jnp.allclose(out_bf16, ref, atol=1e-1, rtol=5e-2), float(
        jnp.max(jnp.abs(out_bf16 - ref)))

    print("KERNEL_OK")
</pallas_src>

<mosaic_0001>
module attributes {stable_mosaic.version = 11 : i64} {
  func.func @_upsample_kernel(%arg0: i32, %arg1: i32, %arg2: memref<1x18x18x4xf32, #tpu.memory_space<vmem>>, %arg3: memref<36x64xf32, #tpu.memory_space<vmem>>, %arg4: memref<64x64xf32, #tpu.memory_space<vmem>>, %arg5: memref<1x4x8x256xf32, #tpu.memory_space<vmem>>) attributes {dimension_semantics = [#tpu.dimension_semantics<parallel>, #tpu.dimension_semantics<arbitrary>], iteration_bounds = array<i64: 2, 2>, scalar_prefetch = 0 : i64, scratch_operands = 0 : i64, tpu.core_type = #tpu.core_type<tc>, window_params = [{transform_indices = @transform_0, window_bounds = array<i64: 1, 18, 18, 4>}, {pipeline_mode = #tpu.pipeline_mode<synchronous>, transform_indices = @transform_1, window_bounds = array<i64: 36, 64>}, {pipeline_mode = #tpu.pipeline_mode<synchronous>, transform_indices = @transform_2, window_bounds = array<i64: 64, 64>}, {transform_indices = @transform_3, window_bounds = array<i64: 1, 4, 8, 256>}]} {
    %c8_i32 = arith.constant 8 : i32
    %0 = arith.muli %arg1, %c8_i32 : i32
    %c0 = arith.constant 0 : index
    %1 = arith.index_cast %0 : i32 to index
    %c0_0 = arith.constant 0 : index
    %c0_1 = arith.constant 0 : index
    %2 = vector.load %arg2[%c0, %1, %c0_0, %c0_1] : memref<1x18x18x4xf32, #tpu.memory_space<vmem>>, vector<1x10x18x4xf32>
    %3 = vector.shape_cast %2 : vector<1x10x18x4xf32> to vector<10x18x4xf32>
    %c0_2 = arith.constant 0 : index
    %c0_3 = arith.constant 0 : index
    %4 = vector.load %arg3[%c0_2, %c0_3] : memref<36x64xf32, #tpu.memory_space<vmem>>, vector<36x64xf32>
    %c0_4 = arith.constant 0 : index
    %c0_5 = arith.constant 0 : index
    %5 = vector.load %arg4[%c0_4, %c0_5] : memref<64x64xf32, #tpu.memory_space<vmem>>, vector<64x64xf32>
    %cst = arith.constant 0.000000e+00 : f32
    %6 = vector.broadcast %cst : f32 to vector<128x64xf32>
    %7 = vector.extract_strided_slice %3 {offsets = [0, 0, 0], sizes = [8, 16, 4], strides = [1, 1, 1]} : vector<10x18x4xf32> to vector<8x16x4xf32>
    %8 = vector.shape_cast %7 : vector<8x16x4xf32> to vector<128x4xf32>
    %9 = vector.extract_strided_slice %4 {offsets = [0, 0], sizes = [4, 64], strides = [1, 1]} : vector<36x64xf32> to vector<4x64xf32>
    %cst_6 = arith.constant dense<0.000000e+00> : vector<128x64xf32>
    %10 = tpu.matmul %8, %9, %cst_6 {dimension_numbers = #tpu.dot_dimension_numbers<[1], [0], [0], [1], [0, 0, 1, 1], [], []>} : vector<128x4xf32>, vector<4x64xf32>, vector<128x64xf32> -> vector<128x64xf32>
    %11 = arith.addf %6, %10 : vector<128x64xf32>
    %12 = vector.extract_strided_slice %3 {offsets = [0, 1, 0], sizes = [8, 16, 4], strides = [1, 1, 1]} : vector<10x18x4xf32> to vector<8x16x4xf32>
    %13 = vector.shape_cast %12 : vector<8x16x4xf32> to vector<128x4xf32>
    %14 = vector.extract_strided_slice %4 {offsets = [4, 0], sizes = [4, 64], strides = [1, 1]} : vector<36x64xf32> to vector<4x64xf32>
    %cst_7 = arith.constant dense<0.000000e+00> : vector<128x64xf32>
    %15 = tpu.matmul %13, %14, %cst_7 {dimension_numbers = #tpu.dot_dimension_numbers<[1], [0], [0], [1], [0, 0, 1, 1], [], []>} : vector<128x4xf32>, vector<4x64xf32>, vector<128x64xf32> -> vector<128x64xf32>
    %16 = arith.addf %11, %15 : vector<128x64xf32>
    %17 = vector.extract_strided_slice %3 {offsets = [0, 2, 0], sizes = [8, 16, 4], strides = [1, 1, 1]} : vector<10x18x4xf32> to vector<8x16x4xf32>
    %18 = vector.shape_cast %17 : vector<8x16x4xf32> to vector<128x4xf32>
    %19 = vector.extract_strided_slice %4 {offsets = [8, 0], sizes = [4, 64], strides = [1, 1]} : vector<36x64xf32> to vector<4x64xf32>
    %cst_8 = arith.constant dense<0.000000e+00> : vector<128x64xf32>
    %20 = tpu.matmul %18, %19, %cst_8 {dimension_numbers = #tpu.dot_dimension_numbers<[1], [0], [0], [1], [0, 0, 1, 1], [], []>} : vector<128x4xf32>, vector<4x64xf32>, vector<128x64xf32> -> vector<128x64xf32>
    %21 = arith.addf %16, %20 : vector<128x64xf32>
    %22 = vector.extract_strided_slice %3 {offsets = [1, 0, 0], sizes = [8, 16, 4], strides = [1, 1, 1]} : vector<10x18x4xf32> to vector<8x16x4xf32>
    %23 = vector.shape_cast %22 : vector<8x16x4xf32> to vector<128x4xf32>
    %24 = vector.extract_strided_slice %4 {offsets = [12, 0], sizes = [4, 64], strides = [1, 1]} : vector<36x64xf32> to vector<4x64xf32>
    %cst_9 = arith.constant dense<0.000000e+00> : vector<128x64xf32>
    %25 = tpu.matmul %23, %24, %cst_9 {dimension_numbers = #tpu.dot_dimension_numbers<[1], [0], [0], [1], [0, 0, 1, 1], [], []>} : vector<128x4xf32>, vector<4x64xf32>, vector<128x64xf32> -> vector<128x64xf32>
    %26 = arith.addf %21, %25 : vector<128x64xf32>
    %27 = vector.extract_strided_slice %3 {offsets = [1, 1, 0], sizes = [8, 16, 4], strides = [1, 1, 1]} : vector<10x18x4xf32> to vector<8x16x4xf32>
    %28 = vector.shape_cast %27 : vector<8x16x4xf32> to vector<128x4xf32>
    %29 = vector.extract_strided_slice %4 {offsets = [16, 0], sizes = [4, 64], strides = [1, 1]} : vector<36x64xf32> to vector<4x64xf32>
    %cst_10 = arith.constant dense<0.000000e+00> : vector<128x64xf32>
    %30 = tpu.matmul %28, %29, %cst_10 {dimension_numbers = #tpu.dot_dimension_numbers<[1], [0], [0], [1], [0, 0, 1, 1], [], []>} : vector<128x4xf32>, vector<4x64xf32>, vector<128x64xf32> -> vector<128x64xf32>
    %31 = arith.addf %26, %30 : vector<128x64xf32>
    %32 = vector.extract_strided_slice %3 {offsets = [1, 2, 0], sizes = [8, 16, 4], strides = [1, 1, 1]} : vector<10x18x4xf32> to vector<8x16x4xf32>
    %33 = vector.shape_cast %32 : vector<8x16x4xf32> to vector<128x4xf32>
    %34 = vector.extract_strided_slice %4 {offsets = [20, 0], sizes = [4, 64], strides = [1, 1]} : vector<36x64xf32> to vector<4x64xf32>
    %cst_11 = arith.constant dense<0.000000e+00> : vector<128x64xf32>
    %35 = tpu.matmul %33, %34, %cst_11 {dimension_numbers = #tpu.dot_dimension_numbers<[1], [0], [0], [1], [0, 0, 1, 1], [], []>} : vector<128x4xf32>, vector<4x64xf32>, vector<128x64xf32> -> vector<128x64xf32>
    %36 = arith.addf %31, %35 : vector<128x64xf32>
    %37 = vector.extract_strided_slice %3 {offsets = [2, 0, 0], sizes = [8, 16, 4], strides = [1, 1, 1]} : vector<10x18x4xf32> to vector<8x16x4xf32>
    %38 = vector.shape_cast %37 : vector<8x16x4xf32> to vector<128x4xf32>
    %39 = vector.extract_strided_slice %4 {offsets = [24, 0], sizes = [4, 64], strides = [1, 1]} : vector<36x64xf32> to vector<4x64xf32>
    %cst_12 = arith.constant dense<0.000000e+00> : vector<128x64xf32>
    %40 = tpu.matmul %38, %39, %cst_12 {dimension_numbers = #tpu.dot_dimension_numbers<[1], [0], [0], [1], [0, 0, 1, 1], [], []>} : vector<128x4xf32>, vector<4x64xf32>, vector<128x64xf32> -> vector<128x64xf32>
    %41 = arith.addf %36, %40 : vector<128x64xf32>
    %42 = vector.extract_strided_slice %3 {offsets = [2, 1, 0], sizes = [8, 16, 4], strides = [1, 1, 1]} : vector<10x18x4xf32> to vector<8x16x4xf32>
    %43 = vector.shape_cast %42 : vector<8x16x4xf32> to vector<128x4xf32>
    %44 = vector.extract_strided_slice %4 {offsets = [28, 0], sizes = [4, 64], strides = [1, 1]} : vector<36x64xf32> to vector<4x64xf32>
    %cst_13 = arith.constant dense<0.000000e+00> : vector<128x64xf32>
    %45 = tpu.matmul %43, %44, %cst_13 {dimension_numbers = #tpu.dot_dimension_numbers<[1], [0], [0], [1], [0, 0, 1, 1], [], []>} : vector<128x4xf32>, vector<4x64xf32>, vector<128x64xf32> -> vector<128x64xf32>
    %46 = arith.addf %41, %45 : vector<128x64xf32>
    %47 = vector.extract_strided_slice %3 {offsets = [2, 2, 0], sizes = [8, 16, 4], strides = [1, 1, 1]} : vector<10x18x4xf32> to vector<8x16x4xf32>
    %48 = vector.shape_cast %47 : vector<8x16x4xf32> to vector<128x4xf32>
    %49 = vector.extract_strided_slice %4 {offsets = [32, 0], sizes = [4, 64], strides = [1, 1]} : vector<36x64xf32> to vector<4x64xf32>
    %cst_14 = arith.constant dense<0.000000e+00> : vector<128x64xf32>
    %50 = tpu.matmul %48, %49, %cst_14 {dimension_numbers = #tpu.dot_dimension_numbers<[1], [0], [0], [1], [0, 0, 1, 1], [], []>} : vector<128x4xf32>, vector<4x64xf32>, vector<128x64xf32> -> vector<128x64xf32>
    %51 = arith.addf %46, %50 : vector<128x64xf32>
    %52 = vector.extract_strided_slice %51 {offsets = [0, 0], sizes = [16, 64], strides = [1, 1]} : vector<128x64xf32> to vector<16x64xf32>
    %53 = tpu.transpose %52, [1, 0] : vector<16x64xf32> -> vector<64x16xf32>
    %54 = vector.extract_strided_slice %51 {offsets = [16, 0], sizes = [16, 64], strides = [1, 1]} : vector<128x64xf32> to vector<16x64xf32>
    %55 = tpu.transpose %54, [1, 0] : vector<16x64xf32> -> vector<64x16xf32>
    %56 = vector.extract_strided_slice %51 {offsets = [32, 0], sizes = [16, 64], strides = [1, 1]} : vector<128x64xf32> to vector<16x64xf32>
    %57 = tpu.transpose %56, [1, 0] : vector<16x64xf32> -> vector<64x16xf32>
    %58 = vector.extract_strided_slice %51 {offsets = [48, 0], sizes = [16, 64], strides = [1, 1]} : vector<128x64xf32> to vector<16x64xf32>
    %59 = tpu.transpose %58, [1, 0] : vector<16x64xf32> -> vector<64x16xf32>
    %60 = vector.extract_strided_slice %51 {offsets = [64, 0], sizes = [16, 64], strides = [1, 1]} : vector<128x64xf32> to vector<16x64xf32>
    %61 = tpu.transpose %60, [1, 0] : vector<16x64xf32> -> vector<64x16xf32>
    %62 = vector.extract_strided_slice %51 {offsets = [80, 0], sizes = [16, 64], strides = [1, 1]} : vector<128x64xf32> to vector<16x64xf32>
    %63 = tpu.transpose %62, [1, 0] : vector<16x64xf32> -> vector<64x16xf32>
    %64 = vector.extract_strided_slice %51 {offsets = [96, 0], sizes = [16, 64], strides = [1, 1]} : vector<128x64xf32> to vector<16x64xf32>
    %65 = tpu.transpose %64, [1, 0] : vector<16x64xf32> -> vector<64x16xf32>
    %66 = vector.extract_strided_slice %51 {offsets = [112, 0], sizes = [16, 64], strides = [1, 1]} : vector<128x64xf32> to vector<16x64xf32>
    %67 = tpu.transpose %66, [1, 0] : vector<16x64xf32> -> vector<64x16xf32>
    %68 = vector.extract_strided_slice %53 {offsets = [0, 0], sizes = [4, 16], strides = [1, 1]} : vector<64x16xf32> to vector<4x16xf32>
    %69 = vector.extract_strided_slice %55 {offsets = [0, 0], sizes = [4, 16], strides = [1, 1]} : vector<64x16xf32> to vector<4x16xf32>
    %70 = vector.extract_strided_slice %57 {offsets = [0, 0], sizes = [4, 16], strides = [1, 1]} : vector<64x16xf32> to vector<4x16xf32>
    %71 = vector.extract_strided_slice %59 {offsets = [0, 0], sizes = [4, 16], strides = [1, 1]} : vector<64x16xf32> to vector<4x16xf32>
    %72 = vector.extract_strided_slice %61 {offsets = [0, 0], sizes = [4, 16], strides = [1, 1]} : vector<64x16xf32> to vector<4x16xf32>
    %73 = vector.extract_strided_slice %63 {offsets = [0, 0], sizes = [4, 16], strides = [1, 1]} : vector<64x16xf32> to vector<4x16xf32>
    %74 = vector.extract_strided_slice %65 {offsets = [0, 0], sizes = [4, 16], strides = [1, 1]} : vector<64x16xf32> to vector<4x16xf32>
    %75 = vector.extract_strided_slice %67 {offsets = [0, 0], sizes = [4, 16], strides = [1, 1]} : vector<64x16xf32> to vector<4x16xf32>
    %76 = tpu.concatenate %68, %69, %70, %71, %72, %73, %74, %75 in 0 : vector<4x16xf32>, vector<4x16xf32>, vector<4x16xf32>, vector<4x16xf32>, vector<4x16xf32>, vector<4x16xf32>, vector<4x16xf32>, vector<4x16xf32> -> vector<32x16xf32>
    %77 = vector.extract_strided_slice %53 {offsets = [4, 0], sizes = [4, 16], strides = [1, 1]} : vector<64x16xf32> to vector<4x16xf32>
    %78 = vector.extract_strided_slice %55 {offsets = [4, 0], sizes = [4, 16], strides = [1, 1]} : vector<64x16xf32> to vector<4x16xf32>
    %79 = vector.extract_strided_slice %57 {offsets = [4, 0], sizes = [4, 16], strides = [1, 1]} : vector<64x16xf32> to vector<4x16xf32>
    %80 = vector.extract_strided_slice %59 {offsets = [4, 0], sizes = [4, 16], strides = [1, 1]} : vector<64x16xf32> to vector<4x16xf32>
    %81 = vector.extract_strided_slice %61 {offsets = [4, 0], sizes = [4, 16], strides = [1, 1]} : vector<64x16xf32> to vector<4x16xf32>
    %82 = vector.extract_strided_slice %63 {offsets = [4, 0], sizes = [4, 16], strides = [1, 1]} : vector<64x16xf32> to vector<4x16xf32>
    %83 = vector.extract_strided_slice %65 {offsets = [4, 0], sizes = [4, 16], strides = [1, 1]} : vector<64x16xf32> to vector<4x16xf32>
    %84 = vector.extract_strided_slice %67 {offsets = [4, 0], sizes = [4, 16], strides = [1, 1]} : vector<64x16xf32> to vector<4x16xf32>
    %85 = tpu.concatenate %77, %78, %79, %80, %81, %82, %83, %84 in 0 : vector<4x16xf32>, vector<4x16xf32>, vector<4x16xf32>, vector<4x16xf32>, vector<4x16xf32>, vector<4x16xf32>, vector<4x16xf32>, vector<4x16xf32> -> vector<32x16xf32>
    %86 = vector.extract_strided_slice %53 {offsets = [8, 0], sizes = [4, 16], strides = [1, 1]} : vector<64x16xf32> to vector<4x16xf32>
    %87 = vector.extract_strided_slice %55 {offsets = [8, 0], sizes = [4, 16], strides = [1, 1]} : vector<64x16xf32> to vector<4x16xf32>
    %88 = vector.extract_strided_slice %57 {offsets = [8, 0], sizes = [4, 16], strides = [1, 1]} : vector<64x16xf32> to vector<4x16xf32>
    %89 = vector.extract_strided_slice %59 {offsets = [8, 0], sizes = [4, 16], strides = [1, 1]} : vector<64x16xf32> to vector<4x16xf32>
    %90 = vector.extract_strided_slice %61 {offsets = [8, 0], sizes = [4, 16], strides = [1, 1]} : vector<64x16xf32> to vector<4x16xf32>
    %91 = vector.extract_strided_slice %63 {offsets = [8, 0], sizes = [4, 16], strides = [1, 1]} : vector<64x16xf32> to vector<4x16xf32>
    %92 = vector.extract_strided_slice %65 {offsets = [8, 0], sizes = [4, 16], strides = [1, 1]} : vector<64x16xf32> to vector<4x16xf32>
    %93 = vector.extract_strided_slice %67 {offsets = [8, 0], sizes = [4, 16], strides = [1, 1]} : vector<64x16xf32> to vector<4x16xf32>
    %94 = tpu.concatenate %86, %87, %88, %89, %90, %91, %92, %93 in 0 : vector<4x16xf32>, vector<4x16xf32>, vector<4x16xf32>, vector<4x16xf32>, vector<4x16xf32>, vector<4x16xf32>, vector<4x16xf32>, vector<4x16xf32> -> vector<32x16xf32>
    %95 = vector.extract_strided_slice %53 {offsets = [12, 0], sizes = [4, 16], strides = [1, 1]} : vector<64x16xf32> to vector<4x16xf32>
    %96 = vector.extract_strided_slice %55 {offsets = [12, 0], sizes = [4, 16], strides = [1, 1]} : vector<64x16xf32> to vector<4x16xf32>
    %97 = vector.extract_strided_slice %57 {offsets = [12, 0], sizes = [4, 16], strides = [1, 1]} : vector<64x16xf32> to vector<4x16xf32>
    %98 = vector.extract_strided_slice %59 {offsets = [12, 0], sizes = [4, 16], strides = [1, 1]} : vector<64x16xf32> to vector<4x16xf32>
    %99 = vector.extract_strided_slice %61 {offsets = [12, 0], sizes = [4, 16], strides = [1, 1]} : vector<64x16xf32> to vector<4x16xf32>
    %100 = vector.extract_strided_slice %63 {offsets = [12, 0], sizes = [4, 16], strides = [1, 1]} : vector<64x16xf32> to vector<4x16xf32>
    %101 = vector.extract_strided_slice %65 {offsets = [12, 0], sizes = [4, 16], strides = [1, 1]} : vector<64x16xf32> to vector<4x16xf32>
    %102 = vector.extract_strided_slice %67 {offsets = [12, 0], sizes = [4, 16], strides = [1, 1]} : vector<64x16xf32> to vector<4x16xf32>
    %103 = tpu.concatenate %95, %96, %97, %98, %99, %100, %101, %102 in 0 : vector<4x16xf32>, vector<4x16xf32>, vector<4x16xf32>, vector<4x16xf32>, vector<4x16xf32>, vector<4x16xf32>, vector<4x16xf32>, vector<4x16xf32> -> vector<32x16xf32>
    %104 = tpu.concatenate %76, %85, %94, %103 in 1 : vector<32x16xf32>, vector<32x16xf32>, vector<32x16xf32>, vector<32x16xf32> -> vector<32x64xf32>
    %cst_15 = arith.constant dense<0.000000e+00> : vector<32x64xf32>
    %105 = tpu.matmul %104, %5, %cst_15 {dimension_numbers = #tpu.dot_dimension_numbers<[1], [0], [0], [1], [0, 0, 1, 1], [], []>} : vector<32x64xf32>, vector<64x64xf32>, vector<32x64xf32> -> vector<32x64xf32>
    %106 = vector.extract_strided_slice %105 {offsets = [0, 0], sizes = [4, 64], strides = [1, 1]} : vector<32x64xf32> to vector<4x64xf32>
    %107 = vector.extract_strided_slice %105 {offsets = [4, 0], sizes = [4, 64], strides = [1, 1]} : vector<32x64xf32> to vector<4x64xf32>
    %108 = vector.extract_strided_slice %105 {offsets = [8, 0], sizes = [4, 64], strides = [1, 1]} : vector<32x64xf32> to vector<4x64xf32>
    %109 = vector.extract_strided_slice %105 {offsets = [12, 0], sizes = [4, 64], strides = [1, 1]} : vector<32x64xf32> to vector<4x64xf32>
    %110 = vector.extract_strided_slice %105 {offsets = [16, 0], sizes = [4, 64], strides = [1, 1]} : vector<32x64xf32> to vector<4x64xf32>
    %111 = vector.extract_strided_slice %105 {offsets = [20, 0], sizes = [4, 64], strides = [1, 1]} : vector<32x64xf32> to vector<4x64xf32>
    %112 = vector.extract_strided_slice %105 {offsets = [24, 0], sizes = [4, 64], strides = [1, 1]} : vector<32x64xf32> to vector<4x64xf32>
    %113 = vector.extract_strided_slice %105 {offsets = [28, 0], sizes = [4, 64], strides = [1, 1]} : vector<32x64xf32> to vector<4x64xf32>
    %114 = vector.extract_strided_slice %53 {offsets = [16, 0], sizes = [4, 16], strides = [1, 1]} : vector<64x16xf32> to vector<4x16xf32>
    %115 = vector.extract_strided_slice %55 {offsets = [16, 0], sizes = [4, 16], strides = [1, 1]} : vector<64x16xf32> to vector<4x16xf32>
    %116 = vector.extract_strided_slice %57 {offsets = [16, 0], sizes = [4, 16], strides = [1, 1]} : vector<64x16xf32> to vector<4x16xf32>
    %117 = vector.extract_strided_slice %59 {offsets = [16, 0], sizes = [4, 16], strides = [1, 1]} : vector<64x16xf32> to vector<4x16xf32>
    %118 = vector.extract_strided_slice %61 {offsets = [16, 0], sizes = [4, 16], strides = [1, 1]} : vector<64x16xf32> to vector<4x16xf32>
    %119 = vector.extract_strided_slice %63 {offsets = [16, 0], sizes = [4, 16], strides = [1, 1]} : vector<64x16xf32> to vector<4x16xf32>
    %120 = vector.extract_strided_slice %65 {offsets = [16, 0], sizes = [4, 16], strides = [1, 1]} : vector<64x16xf32> to vector<4x16xf32>
    %121 = vector.extract_strided_slice %67 {offsets = [16, 0], sizes = [4, 16], strides = [1, 1]} : vector<64x16xf32> to vector<4x16xf32>
    %122 = tpu.concatenate %114, %115, %116, %117, %118, %119, %120, %121 in 0 : vector<4x16xf32>, vector<4x16xf32>, vector<4x16xf32>, vector<4x16xf32>, vector<4x16xf32>, vector<4x16xf32>, vector<4x16xf32>, vector<4x16xf32> -> vector<32x16xf32>
    %123 = vector.extract_strided_slice %53 {offsets = [20, 0], sizes = [4, 16], strides = [1, 1]} : vector<64x16xf32> to vector<4x16xf32>
    %124 = vector.extract_strided_slice %55 {offsets = [20, 0], sizes = [4, 16], strides = [1, 1]} : vector<64x16xf32> to vector<4x16xf32>
    %125 = vector.extract_strided_slice %57 {offsets = [20, 0], sizes = [4, 16], strides = [1, 1]} : vector<64x16xf32> to vector<4x16xf32>
    %126 = vector.extract_strided_slice %59 {offsets = [20, 0], sizes = [4, 16], strides = [1, 1]} : vector<64x16xf32> to vector<4x16xf32>
    %127 = vector.extract_strided_slice %61 {offsets = [20, 0], sizes = [4, 16], strides = [1, 1]} : vector<64x16xf32> to vector<4x16xf32>
    %128 = vector.extract_strided_slice %63 {offsets = [20, 0], sizes = [4, 16], strides = [1, 1]} : vector<64x16xf32> to vector<4x16xf32>
    %129 = vector.extract_strided_slice %65 {offsets = [20, 0], sizes = [4, 16], strides = [1, 1]} : vector<64x16xf32> to vector<4x16xf32>
    %130 = vector.extract_strided_slice %67 {offsets = [20, 0], sizes = [4, 16], strides = [1, 1]} : vector<64x16xf32> to vector<4x16xf32>
    %131 = tpu.concatenate %123, %124, %125, %126, %127, %128, %129, %130 in 0 : vector<4x16xf32>, vector<4x16xf32>, vector<4x16xf32>, vector<4x16xf32>, vector<4x16xf32>, vector<4x16xf32>, vector<4x16xf32>, vector<4x16xf32> -> vector<32x16xf32>
    %132 = vector.extract_strided_slice %53 {offsets = [24, 0], sizes = [4, 16], strides = [1, 1]} : vector<64x16xf32> to vector<4x16xf32>
    %133 = vector.extract_strided_slice %55 {offsets = [24, 0], sizes = [4, 16], strides = [1, 1]} : vector<64x16xf32> to vector<4x16xf32>
    %134 = vector.extract_strided_slice %57 {offsets = [24, 0], sizes = [4, 16], strides = [1, 1]} : vector<64x16xf32> to vector<4x16xf32>
    %135 = vector.extract_strided_slice %59 {offsets = [24, 0], sizes = [4, 16], strides = [1, 1]} : vector<64x16xf32> to vector<4x16xf32>
    %136 = vector.extract_strided_slice %61 {offsets = [24, 0], sizes = [4, 16], strides = [1, 1]} : vector<64x16xf32> to vector<4x16xf32>
    %137 = vector.extract_strided_slice %63 {offsets = [24, 0], sizes = [4, 16], strides = [1, 1]} : vector<64x16xf32> to vector<4x16xf32>
    %138 = vector.extract_strided_slice %65 {offsets = [24, 0], sizes = [4, 16], strides = [1, 1]} : vector<64x16xf32> to vector<4x16xf32>
    %139 = vector.extract_strided_slice %67 {offsets = [24, 0], sizes = [4, 16], strides = [1, 1]} : vector<64x16xf32> to vector<4x16xf32>
    %140 = tpu.concatenate %132, %133, %134, %135, %136, %137, %138, %139 in 0 : vector<4x16xf32>, vector<4x16xf32>, vector<4x16xf32>, vector<4x16xf32>, vector<4x16xf32>, vector<4x16xf32>, vector<4x16xf32>, vector<4x16xf32> -> vector<32x16xf32>
    %141 = vector.extract_strided_slice %53 {offsets = [28, 0], sizes = [4, 16], strides = [1, 1]} : vector<64x16xf32> to vector<4x16xf32>
    %142 = vector.extract_strided_slice %55 {offsets = [28, 0], sizes = [4, 16], strides = [1, 1]} : vector<64x16xf32> to vector<4x16xf32>
    %143 = vector.extract_strided_slice %57 {offsets = [28, 0], sizes = [4, 16], strides = [1, 1]} : vector<64x16xf32> to vector<4x16xf32>
    %144 = vector.extract_strided_slice %59 {offsets = [28, 0], sizes = [4, 16], strides = [1, 1]} : vector<64x16xf32> to vector<4x16xf32>
    %145 = vector.extract_strided_slice %61 {offsets = [28, 0], sizes = [4, 16], strides = [1, 1]} : vector<64x16xf32> to vector<4x16xf32>
    %146 = vector.extract_strided_slice %63 {offsets = [28, 0], sizes = [4, 16], strides = [1, 1]} : vector<64x16xf32> to vector<4x16xf32>
    %147 = vector.extract_strided_slice %65 {offsets = [28, 0], sizes = [4, 16], strides = [1, 1]} : vector<64x16xf32> to vector<4x16xf32>
    %148 = vector.extract_strided_slice %67 {offsets = [28, 0], sizes = [4, 16], strides = [1, 1]} : vector<64x16xf32> to vector<4x16xf32>
    %149 = tpu.concatenate %141, %142, %143, %144, %145, %146, %147, %148 in 0 : vector<4x16xf32>, vector<4x16xf32>, vector<4x16xf32>, vector<4x16xf32>, vector<4x16xf32>, vector<4x16xf32>, vector<4x16xf32>, vector<4x16xf32> -> vector<32x16xf32>
    %150 = tpu.concatenate %122, %131, %140, %149 in 1 : vector<32x16xf32>, vector<32x16xf32>, vector<32x16xf32>, vector<32x16xf32> -> vector<32x64xf32>
    %cst_16 = arith.constant dense<0.000000e+00> : vector<32x64xf32>
    %151 = tpu.matmul %150, %5, %cst_16 {dimension_numbers = #tpu.dot_dimension_numbers<[1], [0], [0], [1], [0, 0, 1, 1], [], []>} : vector<32x64xf32>, vector<64x64xf32>, vector<32x64xf32> -> vector<32x64xf32>
    %152 = vector.extract_strided_slice %151 {offsets = [0, 0], sizes = [4, 64], strides = [1, 1]} : vector<32x64xf32> to vector<4x64xf32>
    %153 = vector.extract_strided_slice %151 {offsets = [4, 0], sizes = [4, 64], strides = [1, 1]} : vector<32x64xf32> to vector<4x64xf32>
    %154 = vector.extract_strided_slice %151 {offsets = [8, 0], sizes = [4, 64], strides = [1, 1]} : vector<32x64xf32> to vector<4x64xf32>
    %155 = vector.extract_strided_slice %151 {offsets = [12, 0], sizes = [4, 64], strides = [1, 1]} : vector<32x64xf32> to vector<4x64xf32>
    %156 = vector.extract_strided_slice %151 {offsets = [16, 0], sizes = [4, 64], strides = [1, 1]} : vector<32x64xf32> to vector<4x64xf32>
    %157 = vector.extract_strided_slice %151 {offsets = [20, 0], sizes = [4, 64], strides = [1, 1]} : vector<32x64xf32> to vector<4x64xf32>
    %158 = vector.extract_strided_slice %151 {offsets = [24, 0], sizes = [4, 64], strides = [1, 1]} : vector<32x64xf32> to vector<4x64xf32>
    %159 = vector.extract_strided_slice %151 {offsets = [28, 0], sizes = [4, 64], strides = [1, 1]} : vector<32x64xf32> to vector<4x64xf32>
    %160 = vector.extract_strided_slice %53 {offsets = [32, 0], sizes = [4, 16], strides = [1, 1]} : vector<64x16xf32> to vector<4x16xf32>
    %161 = vector.extract_strided_slice %55 {offsets = [32, 0], sizes = [4, 16], strides = [1, 1]} : vector<64x16xf32> to vector<4x16xf32>
    %162 = vector.extract_strided_slice %57 {offsets = [32, 0], sizes = [4, 16], strides = [1, 1]} : vector<64x16xf32> to vector<4x16xf32>
    %163 = vector.extract_strided_slice %59 {offsets = [32, 0], sizes = [4, 16], strides = [1, 1]} : vector<64x16xf32> to vector<4x16xf32>
    %164 = vector.extract_strided_slice %61 {offsets = [32, 0], sizes = [4, 16], strides = [1, 1]} : vector<64x16xf32> to vector<4x16xf32>
    %165 = vector.extract_strided_slice %63 {offsets = [32, 0], sizes = [4, 16], strides = [1, 1]} : vector<64x16xf32> to vector<4x16xf32>
    %166 = vector.extract_strided_slice %65 {offsets = [32, 0], sizes = [4, 16], strides = [1, 1]} : vector<64x16xf32> to vector<4x16xf32>
    %167 = vector.extract_strided_slice %67 {offsets = [32, 0], sizes = [4, 16], strides = [1, 1]} : vector<64x16xf32> to vector<4x16xf32>
    %168 = tpu.concatenate %160, %161, %162, %163, %164, %165, %166, %167 in 0 : vector<4x16xf32>, vector<4x16xf32>, vector<4x16xf32>, vector<4x16xf32>, vector<4x16xf32>, vector<4x16xf32>, vector<4x16xf32>, vector<4x16xf32> -> vector<32x16xf32>
    %169 = vector.extract_strided_slice %53 {offsets = [36, 0], sizes = [4, 16], strides = [1, 1]} : vector<64x16xf32> to vector<4x16xf32>
    %170 = vector.extract_strided_slice %55 {offsets = [36, 0], sizes = [4, 16], strides = [1, 1]} : vector<64x16xf32> to vector<4x16xf32>
    %171 = vector.extract_strided_slice %57 {offsets = [36, 0], sizes = [4, 16], strides = [1, 1]} : vector<64x16xf32> to vector<4x16xf32>
    %172 = vector.extract_strided_slice %59 {offsets = [36, 0], sizes = [4, 16], strides = [1, 1]} : vector<64x16xf32> to vector<4x16xf32>
    %173 = vector.extract_strided_slice %61 {offsets = [36, 0], sizes = [4, 16], strides = [1, 1]} : vector<64x16xf32> to vector<4x16xf32>
    %174 = vector.extract_strided_slice %63 {offsets = [36, 0], sizes = [4, 16], strides = [1, 1]} : vector<64x16xf32> to vector<4x16xf32>
    %175 = vector.extract_strided_slice %65 {offsets = [36, 0], sizes = [4, 16], strides = [1, 1]} : vector<64x16xf32> to vector<4x16xf32>
    %176 = vector.extract_strided_slice %67 {offsets = [36, 0], sizes = [4, 16], strides = [1, 1]} : vector<64x16xf32> to vector<4x16xf32>
    %177 = tpu.concatenate %169, %170, %171, %172, %173, %174, %175, %176 in 0 : vector<4x16xf32>, vector<4x16xf32>, vector<4x16xf32>, vector<4x16xf32>, vector<4x16xf32>, vector<4x16xf32>, vector<4x16xf32>, vector<4x16xf32> -> vector<32x16xf32>
    %178 = vector.extract_strided_slice %53 {offsets = [40, 0], sizes = [4, 16], strides = [1, 1]} : vector<64x16xf32> to vector<4x16xf32>
    %179 = vector.extract_strided_slice %55 {offsets = [40, 0], sizes = [4, 16], strides = [1, 1]} : vector<64x16xf32> to vector<4x16xf32>
    %180 = vector.extract_strided_slice %57 {offsets = [40, 0], sizes = [4, 16], strides = [1, 1]} : vector<64x16xf32> to vector<4x16xf32>
    %181 = vector.extract_strided_slice %59 {offsets = [40, 0], sizes = [4, 16], strides = [1, 1]} : vector<64x16xf32> to vector<4x16xf32>
    %182 = vector.extract_strided_slice %61 {offsets = [40, 0], sizes = [4, 16], strides = [1, 1]} : vector<64x16xf32> to vector<4x16xf32>
    %183 = vector.extract_strided_slice %63 {offsets = [40, 0], sizes = [4, 16], strides = [1, 1]} : vector<64x16xf32> to vector<4x16xf32>
    %184 = vector.extract_strided_slice %65 {offsets = [40, 0], sizes = [4, 16], strides = [1, 1]} : vector<64x16xf32> to vector<4x16xf32>
    %185 = vector.extract_strided_slice %67 {offsets = [40, 0], sizes = [4, 16], strides = [1, 1]} : vector<64x16xf32> to vector<4x16xf32>
    %186 = tpu.concatenate %178, %179, %180, %181, %182, %183, %184, %185 in 0 : vector<4x16xf32>, vector<4x16xf32>, vector<4x16xf32>, vector<4x16xf32>, vector<4x16xf32>, vector<4x16xf32>, vector<4x16xf32>, vector<4x16xf32> -> vector<32x16xf32>
    %187 = vector.extract_strided_slice %53 {offsets = [44, 0], sizes = [4, 16], strides = [1, 1]} : vector<64x16xf32> to vector<4x16xf32>
    %188 = vector.extract_strided_slice %55 {offsets = [44, 0], sizes = [4, 16], strides = [1, 1]} : vector<64x16xf32> to vector<4x16xf32>
    %189 = vector.extract_strided_slice %57 {offsets = [44, 0], sizes = [4, 16], strides = [1, 1]} : vector<64x16xf32> to vector<4x16xf32>
    %190 = vector.extract_strided_slice %59 {offsets = [44, 0], sizes = [4, 16], strides = [1, 1]} : vector<64x16xf32> to vector<4x16xf32>
    %191 = vector.extract_strided_slice %61 {offsets = [44, 0], sizes = [4, 16], strides = [1, 1]} : vector<64x16xf32> to vector<4x16xf32>
    %192 = vector.extract_strided_slice %63 {offsets = [44, 0], sizes = [4, 16], strides = [1, 1]} : vector<64x16xf32> to vector<4x16xf32>
    %193 = vector.extract_strided_slice %65 {offsets = [44, 0], sizes = [4, 16], strides = [1, 1]} : vector<64x16xf32> to vector<4x16xf32>
    %194 = vector.extract_strided_slice %67 {offsets = [44, 0], sizes = [4, 16], strides = [1, 1]} : vector<64x16xf32> to vector<4x16xf32>
    %195 = tpu.concatenate %187, %188, %189, %190, %191, %192, %193, %194 in 0 : vector<4x16xf32>, vector<4x16xf32>, vector<4x16xf32>, vector<4x16xf32>, vector<4x16xf32>, vector<4x16xf32>, vector<4x16xf32>, vector<4x16xf32> -> vector<32x16xf32>
    %196 = tpu.concatenate %168, %177, %186, %195 in 1 : vector<32x16xf32>, vector<32x16xf32>, vector<32x16xf32>, vector<32x16xf32> -> vector<32x64xf32>
    %cst_17 = arith.constant dense<0.000000e+00> : vector<32x64xf32>
    %197 = tpu.matmul %196, %5, %cst_17 {dimension_numbers = #tpu.dot_dimension_numbers<[1], [0], [0], [1], [0, 0, 1, 1], [], []>} : vector<32x64xf32>, vector<64x64xf32>, vector<32x64xf32> -> vector<32x64xf32>
    %198 = vector.extract_strided_slice %197 {offsets = [0, 0], sizes = [4, 64], strides = [1, 1]} : vector<32x64xf32> to vector<4x64xf32>
    %199 = vector.extract_strided_slice %197 {offsets = [4, 0], sizes = [4, 64], strides = [1, 1]} : vector<32x64xf32> to vector<4x64xf32>
    %200 = vector.extract_strided_slice %197 {offsets = [8, 0], sizes = [4, 64], strides = [1, 1]} : vector<32x64xf32> to vector<4x64xf32>
    %201 = vector.extract_strided_slice %197 {offsets = [12, 0], sizes = [4, 64], strides = [1, 1]} : vector<32x64xf32> to vector<4x64xf32>
    %202 = vector.extract_strided_slice %197 {offsets = [16, 0], sizes = [4, 64], strides = [1, 1]} : vector<32x64xf32> to vector<4x64xf32>
    %203 = vector.extract_strided_slice %197 {offsets = [20, 0], sizes = [4, 64], strides = [1, 1]} : vector<32x64xf32> to vector<4x64xf32>
    %204 = vector.extract_strided_slice %197 {offsets = [24, 0], sizes = [4, 64], strides = [1, 1]} : vector<32x64xf32> to vector<4x64xf32>
    %205 = vector.extract_strided_slice %197 {offsets = [28, 0], sizes = [4, 64], strides = [1, 1]} : vector<32x64xf32> to vector<4x64xf32>
    %206 = vector.extract_strided_slice %53 {offsets = [48, 0], sizes = [4, 16], strides = [1, 1]} : vector<64x16xf32> to vector<4x16xf32>
    %207 = vector.extract_strided_slice %55 {offsets = [48, 0], sizes = [4, 16], strides = [1, 1]} : vector<64x16xf32> to vector<4x16xf32>
    %208 = vector.extract_strided_slice %57 {offsets = [48, 0], sizes = [4, 16], strides = [1, 1]} : vector<64x16xf32> to vector<4x16xf32>
    %209 = vector.extract_strided_slice %59 {offsets = [48, 0], sizes = [4, 16], strides = [1, 1]} : vector<64x16xf32> to vector<4x16xf32>
    %210 = vector.extract_strided_slice %61 {offsets = [48, 0], sizes = [4, 16], strides = [1, 1]} : vector<64x16xf32> to vector<4x16xf32>
    %211 = vector.extract_strided_slice %63 {offsets = [48, 0], sizes = [4, 16], strides = [1, 1]} : vector<64x16xf32> to vector<4x16xf32>
    %212 = vector.extract_strided_slice %65 {offsets = [48, 0], sizes = [4, 16], strides = [1, 1]} : vector<64x16xf32> to vector<4x16xf32>
    %213 = vector.extract_strided_slice %67 {offsets = [48, 0], sizes = [4, 16], strides = [1, 1]} : vector<64x16xf32> to vector<4x16xf32>
    %214 = tpu.concatenate %206, %207, %208, %209, %210, %211, %212, %213 in 0 : vector<4x16xf32>, vector<4x16xf32>, vector<4x16xf32>, vector<4x16xf32>, vector<4x16xf32>, vector<4x16xf32>, vector<4x16xf32>, vector<4x16xf32> -> vector<32x16xf32>
    %215 = vector.extract_strided_slice %53 {offsets = [52, 0], sizes = [4, 16], strides = [1, 1]} : vector<64x16xf32> to vector<4x16xf32>
    %216 = vector.extract_strided_slice %55 {offsets = [52, 0], sizes = [4, 16], strides = [1, 1]} : vector<64x16xf32> to vector<4x16xf32>
    %217 = vector.extract_strided_slice %57 {offsets = [52, 0], sizes = [4, 16], strides = [1, 1]} : vector<64x16xf32> to vector<4x16xf32>
    %218 = vector.extract_strided_slice %59 {offsets = [52, 0], sizes = [4, 16], strides = [1, 1]} : vector<64x16xf32> to vector<4x16xf32>
    %219 = vector.extract_strided_slice %61 {offsets = [52, 0], sizes = [4, 16], strides = [1, 1]} : vector<64x16xf32> to vector<4x16xf32>
    %220 = vector.extract_strided_slice %63 {offsets = [52, 0], sizes = [4, 16], strides = [1, 1]} : vector<64x16xf32> to vector<4x16xf32>
    %221 = vector.extract_strided_slice %65 {offsets = [52, 0], sizes = [4, 16], strides = [1, 1]} : vector<64x16xf32> to vector<4x16xf32>
    %222 = vector.extract_strided_slice %67 {offsets = [52, 0], sizes = [4, 16], strides = [1, 1]} : vector<64x16xf32> to vector<4x16xf32>
    %223 = tpu.concatenate %215, %216, %217, %218, %219, %220, %221, %222 in 0 : vector<4x16xf32>, vector<4x16xf32>, vector<4x16xf32>, vector<4x16xf32>, vector<4x16xf32>, vector<4x16xf32>, vector<4x16xf32>, vector<4x16xf32> -> vector<32x16xf32>
    %224 = vector.extract_strided_slice %53 {offsets = [56, 0], sizes = [4, 16], strides = [1, 1]} : vector<64x16xf32> to vector<4x16xf32>
    %225 = vector.extract_strided_slice %55 {offsets = [56, 0], sizes = [4, 16], strides = [1, 1]} : vector<64x16xf32> to vector<4x16xf32>
    %226 = vector.extract_strided_slice %57 {offsets = [56, 0], sizes = [4, 16], strides = [1, 1]} : vector<64x16xf32> to vector<4x16xf32>
    %227 = vector.extract_strided_slice %59 {offsets = [56, 0], sizes = [4, 16], strides = [1, 1]} : vector<64x16xf32> to vector<4x16xf32>
    %228 = vector.extract_strided_slice %61 {offsets = [56, 0], sizes = [4, 16], strides = [1, 1]} : vector<64x16xf32> to vector<4x16xf32>
    %229 = vector.extract_strided_slice %63 {offsets = [56, 0], sizes = [4, 16], strides = [1, 1]} : vector<64x16xf32> to vector<4x16xf32>
    %230 = vector.extract_strided_slice %65 {offsets = [56, 0], sizes = [4, 16], strides = [1, 1]} : vector<64x16xf32> to vector<4x16xf32>
    %231 = vector.extract_strided_slice %67 {offsets = [56, 0], sizes = [4, 16], strides = [1, 1]} : vector<64x16xf32> to vector<4x16xf32>
    %232 = tpu.concatenate %224, %225, %226, %227, %228, %229, %230, %231 in 0 : vector<4x16xf32>, vector<4x16xf32>, vector<4x16xf32>, vector<4x16xf32>, vector<4x16xf32>, vector<4x16xf32>, vector<4x16xf32>, vector<4x16xf32> -> vector<32x16xf32>
    %233 = vector.extract_strided_slice %53 {offsets = [60, 0], sizes = [4, 16], strides = [1, 1]} : vector<64x16xf32> to vector<4x16xf32>
    %234 = vector.extract_strided_slice %55 {offsets = [60, 0], sizes = [4, 16], strides = [1, 1]} : vector<64x16xf32> to vector<4x16xf32>
    %235 = vector.extract_strided_slice %57 {offsets = [60, 0], sizes = [4, 16], strides = [1, 1]} : vector<64x16xf32> to vector<4x16xf32>
    %236 = vector.extract_strided_slice %59 {offsets = [60, 0], sizes = [4, 16], strides = [1, 1]} : vector<64x16xf32> to vector<4x16xf32>
    %237 = vector.extract_strided_slice %61 {offsets = [60, 0], sizes = [4, 16], strides = [1, 1]} : vector<64x16xf32> to vector<4x16xf32>
    %238 = vector.extract_strided_slice %63 {offsets = [60, 0], sizes = [4, 16], strides = [1, 1]} : vector<64x16xf32> to vector<4x16xf32>
    %239 = vector.extract_strided_slice %65 {offsets = [60, 0], sizes = [4, 16], strides = [1, 1]} : vector<64x16xf32> to vector<4x16xf32>
    %240 = vector.extract_strided_slice %67 {offsets = [60, 0], sizes = [4, 16], strides = [1, 1]} : vector<64x16xf32> to vector<4x16xf32>
    %241 = tpu.concatenate %233, %234, %235, %236, %237, %238, %239, %240 in 0 : vector<4x16xf32>, vector<4x16xf32>, vector<4x16xf32>, vector<4x16xf32>, vector<4x16xf32>, vector<4x16xf32>, vector<4x16xf32>, vector<4x16xf32> -> vector<32x16xf32>
    %242 = tpu.concatenate %214, %223, %232, %241 in 1 : vector<32x16xf32>, vector<32x16xf32>, vector<32x16xf32>, vector<32x16xf32> -> vector<32x64xf32>
    %cst_18 = arith.constant dense<0.000000e+00> : vector<32x64xf32>
    %243 = tpu.matmul %242, %5, %cst_18 {dimension_numbers = #tpu.dot_dimension_numbers<[1], [0], [0], [1], [0, 0, 1, 1], [], []>} : vector<32x64xf32>, vector<64x64xf32>, vector<32x64xf32> -> vector<32x64xf32>
    %244 = vector.extract_strided_slice %243 {offsets = [0, 0], sizes = [4, 64], strides = [1, 1]} : vector<32x64xf32> to vector<4x64xf32>
    %245 = vector.extract_strided_slice %243 {offsets = [4, 0], sizes = [4, 64], strides = [1, 1]} : vector<32x64xf32> to vector<4x64xf32>
    %246 = vector.extract_strided_slice %243 {offsets = [8, 0], sizes = [4, 64], strides = [1, 1]} : vector<32x64xf32> to vector<4x64xf32>
    %247 = vector.extract_strided_slice %243 {offsets = [12, 0], sizes = [4, 64], strides = [1, 1]} : vector<32x64xf32> to vector<4x64xf32>
    %248 = vector.extract_strided_slice %243 {offsets = [16, 0], sizes = [4, 64], strides = [1, 1]} : vector<32x64xf32> to vector<4x64xf32>
    %249 = vector.extract_strided_slice %243 {offsets = [20, 0], sizes = [4, 64], strides = [1, 1]} : vector<32x64xf32> to vector<4x64xf32>
    %250 = vector.extract_strided_slice %243 {offsets = [24, 0], sizes = [4, 64], strides = [1, 1]} : vector<32x64xf32> to vector<4x64xf32>
    %251 = vector.extract_strided_slice %243 {offsets = [28, 0], sizes = [4, 64], strides = [1, 1]} : vector<32x64xf32> to vector<4x64xf32>
    %252 = tpu.concatenate %106, %152, %198, %244 in 1 : vector<4x64xf32>, vector<4x64xf32>, vector<4x64xf32>, vector<4x64xf32> -> vector<4x256xf32>
    %c0_19 = arith.constant 0 : index
    %c0_20 = arith.constant 0 : index
    %c0_21 = arith.constant 0 : index
    %c0_22 = arith.constant 0 : index
    %253 = vector.load %arg5[%c0_19, %c0_20, %c0_21, %c0_22] : memref<1x4x8x256xf32, #tpu.memory_space<vmem>>, vector<1x4x1x256xf32>
    %254 = vector.shape_cast %253 : vector<1x4x1x256xf32> to vector<4x256xf32>
    %255 = vector.shape_cast %252 : vector<4x256xf32> to vector<1x4x1x256xf32>
    tpu.vector_store %arg5[%c0_19, %c0_20, %c0_21, %c0_22], %255 {strides = array<i32>} : memref<1x4x8x256xf32, #tpu.memory_space<vmem>>, vector<1x4x1x256xf32>,
    %256 = tpu.concatenate %107, %153, %199, %245 in 1 : vector<4x64xf32>, vector<4x64xf32>, vector<4x64xf32>, vector<4x64xf32> -> vector<4x256xf32>
    %c0_23 = arith.constant 0 : index
    %c0_24 = arith.constant 0 : index
    %c1 = arith.constant 1 : index
    %c0_25 = arith.constant 0 : index
    %257 = vector.load %arg5[%c0_23, %c0_24, %c1, %c0_25] : memref<1x4x8x256xf32, #tpu.memory_space<vmem>>, vector<1x4x1x256xf32>
    %258 = vector.shape_cast %257 : vector<1x4x1x256xf32> to vector<4x256xf32>
    %259 = vector.shape_cast %256 : vector<4x256xf32> to vector<1x4x1x256xf32>
    tpu.vector_store %arg5[%c0_23, %c0_24, %c1, %c0_25], %259 {strides = array<i32>} : memref<1x4x8x256xf32, #tpu.memory_space<vmem>>, vector<1x4x1x256xf32>,
    %260 = tpu.concatenate %108, %154, %200, %246 in 1 : vector<4x64xf32>, vector<4x64xf32>, vector<4x64xf32>, vector<4x64xf32> -> vector<4x256xf32>
    %c0_26 = arith.constant 0 : index
    %c0_27 = arith.constant 0 : index
    %c2 = arith.constant 2 : index
    %c0_28 = arith.constant 0 : index
    %261 = vector.load %arg5[%c0_26, %c0_27, %c2, %c0_28] : memref<1x4x8x256xf32, #tpu.memory_space<vmem>>, vector<1x4x1x256xf32>
    %262 = vector.shape_cast %261 : vector<1x4x1x256xf32> to vector<4x256xf32>
    %263 = vector.shape_cast %260 : vector<4x256xf32> to vector<1x4x1x256xf32>
    tpu.vector_store %arg5[%c0_26, %c0_27, %c2, %c0_28], %263 {strides = array<i32>} : memref<1x4x8x256xf32, #tpu.memory_space<vmem>>, vector<1x4x1x256xf32>,
    %264 = tpu.concatenate %109, %155, %201, %247 in 1 : vector<4x64xf32>, vector<4x64xf32>, vector<4x64xf32>, vector<4x64xf32> -> vector<4x256xf32>
    %c0_29 = arith.constant 0 : index
    %c0_30 = arith.constant 0 : index
    %c3 = arith.constant 3 : index
    %c0_31 = arith.constant 0 : index
    %265 = vector.load %arg5[%c0_29, %c0_30, %c3, %c0_31] : memref<1x4x8x256xf32, #tpu.memory_space<vmem>>, vector<1x4x1x256xf32>
    %266 = vector.shape_cast %265 : vector<1x4x1x256xf32> to vector<4x256xf32>
    %267 = vector.shape_cast %264 : vector<4x256xf32> to vector<1x4x1x256xf32>
    tpu.vector_store %arg5[%c0_29, %c0_30, %c3, %c0_31], %267 {strides = array<i32>} : memref<1x4x8x256xf32, #tpu.memory_space<vmem>>, vector<1x4x1x256xf32>,
    %268 = tpu.concatenate %110, %156, %202, %248 in 1 : vector<4x64xf32>, vector<4x64xf32>, vector<4x64xf32>, vector<4x64xf32> -> vector<4x256xf32>
    %c0_32 = arith.constant 0 : index
    %c0_33 = arith.constant 0 : index
    %c4 = arith.constant 4 : index
    %c0_34 = arith.constant 0 : index
    %269 = vector.load %arg5[%c0_32, %c0_33, %c4, %c0_34] : memref<1x4x8x256xf32, #tpu.memory_space<vmem>>, vector<1x4x1x256xf32>
    %270 = vector.shape_cast %269 : vector<1x4x1x256xf32> to vector<4x256xf32>
    %271 = vector.shape_cast %268 : vector<4x256xf32> to vector<1x4x1x256xf32>
    tpu.vector_store %arg5[%c0_32, %c0_33, %c4, %c0_34], %271 {strides = array<i32>} : memref<1x4x8x256xf32, #tpu.memory_space<vmem>>, vector<1x4x1x256xf32>,
    %272 = tpu.concatenate %111, %157, %203, %249 in 1 : vector<4x64xf32>, vector<4x64xf32>, vector<4x64xf32>, vector<4x64xf32> -> vector<4x256xf32>
    %c0_35 = arith.constant 0 : index
    %c0_36 = arith.constant 0 : index
    %c5 = arith.constant 5 : index
    %c0_37 = arith.constant 0 : index
    %273 = vector.load %arg5[%c0_35, %c0_36, %c5, %c0_37] : memref<1x4x8x256xf32, #tpu.memory_space<vmem>>, vector<1x4x1x256xf32>
    %274 = vector.shape_cast %273 : vector<1x4x1x256xf32> to vector<4x256xf32>
    %275 = vector.shape_cast %272 : vector<4x256xf32> to vector<1x4x1x256xf32>
    tpu.vector_store %arg5[%c0_35, %c0_36, %c5, %c0_37], %275 {strides = array<i32>} : memref<1x4x8x256xf32, #tpu.memory_space<vmem>>, vector<1x4x1x256xf32>,
    %276 = tpu.concatenate %112, %158, %204, %250 in 1 : vector<4x64xf32>, vector<4x64xf32>, vector<4x64xf32>, vector<4x64xf32> -> vector<4x256xf32>
    %c0_38 = arith.constant 0 : index
    %c0_39 = arith.constant 0 : index
    %c6 = arith.constant 6 : index
    %c0_40 = arith.constant 0 : index
    %277 = vector.load %arg5[%c0_38, %c0_39, %c6, %c0_40] : memref<1x4x8x256xf32, #tpu.memory_space<vmem>>, vector<1x4x1x256xf32>
    %278 = vector.shape_cast %277 : vector<1x4x1x256xf32> to vector<4x256xf32>
    %279 = vector.shape_cast %276 : vector<4x256xf32> to vector<1x4x1x256xf32>
    tpu.vector_store %arg5[%c0_38, %c0_39, %c6, %c0_40], %279 {strides = array<i32>} : memref<1x4x8x256xf32, #tpu.memory_space<vmem>>, vector<1x4x1x256xf32>,
    %280 = tpu.concatenate %113, %159, %205, %251 in 1 : vector<4x64xf32>, vector<4x64xf32>, vector<4x64xf32>, vector<4x64xf32> -> vector<4x256xf32>
    %c0_41 = arith.constant 0 : index
    %c0_42 = arith.constant 0 : index
    %c7 = arith.constant 7 : index
    %c0_43 = arith.constant 0 : index
    %281 = vector.load %arg5[%c0_41, %c0_42, %c7, %c0_43] : memref<1x4x8x256xf32, #tpu.memory_space<vmem>>, vector<1x4x1x256xf32>
    %282 = vector.shape_cast %281 : vector<1x4x1x256xf32> to vector<4x256xf32>
    %283 = vector.shape_cast %280 : vector<4x256xf32> to vector<1x4x1x256xf32>
    tpu.vector_store %arg5[%c0_41, %c0_42, %c7, %c0_43], %283 {strides = array<i32>} : memref<1x4x8x256xf32, #tpu.memory_space<vmem>>, vector<1x4x1x256xf32>,
    return
  }
  func.func @transform_0(%arg0: i32, %arg1: i32) -> (i32, i32, i32, i32) {
    %c0_i32 = arith.constant 0 : i32
    %c0_i32_0 = arith.constant 0 : i32
    %c0_i32_1 = arith.constant 0 : i32
    %c0_i32_2 = arith.constant 0 : i32
    return %arg0, %c0_i32, %c0_i32_0, %c0_i32_1 : i32, i32, i32, i32
  }
  func.func @transform_1(%arg0: i32, %arg1: i32) -> (i32, i32) {
    %c0_i32 = arith.constant 0 : i32
    %c0_i32_0 = arith.constant 0 : i32
    %c0_i32_1 = arith.constant 0 : i32
    return %c0_i32, %c0_i32_0 : i32, i32
  }
  func.func @transform_2(%arg0: i32, %arg1: i32) -> (i32, i32) {
    %c0_i32 = arith.constant 0 : i32
    %c0_i32_0 = arith.constant 0 : i32
    %c0_i32_1 = arith.constant 0 : i32
    return %c0_i32, %c0_i32_0 : i32, i32
  }
  func.func @transform_3(%arg0: i32, %arg1: i32) -> (i32, i32, i32, i32) {
    %c0_i32 = arith.constant 0 : i32
    %c0_i32_0 = arith.constant 0 : i32
    %c0_i32_1 = arith.constant 0 : i32
    return %arg0, %c0_i32, %arg1, %c0_i32_0 : i32, i32, i32, i32
  }
}

</mosaic_0001>

<bundles_post_ra>
// kernel: upsample_forward.1
= control target key start
LH: loop header
LB: loop body
LE: loop exit
PB: predicated region body
PF: predicated region fallthrough
CT: control target
= control target key end

     0   :  { %s4438_s12 = smov 0   ;;  %s4440_s13 = smov 0   ;;  %s5815_s0 = inlined_call_operand.vmem [shape: f32[2,18,18,4], index: 0, kind: input, shape index: {}]   ;;  %s5816_s1 = inlined_call_operand.vmem [shape: f32[36,64], index: 1, kind: input, shape index: {}]   ;;  %s5817_s2 = inlined_call_operand.vmem [shape: f32[64,64], index: 2, kind: input, shape index: {}]   ;;  %s5818_s3 = inlined_call_operand.vmem [shape: f32[2,4,16,256], index: 3, kind: output, shape index: {}]  }
   0x1   :  { %s4442_s14 = smov 0   ;;  %s4444_s15 = smov 0  }
   0x2   :  { %s4446_s16 = smov 0   ;;  %s4448_s17 = smov 0  }
   0x3   :  { %s4450_s18 = smov 0  }
   0x4 LB: > { %s22_s19 = sadd.s32 1, %s4403_s16  ;;  %s25_s20 = sadd.s32 1, %s4407_s17  ;;  %s4411_s18 = sphi %s4450_s18, %s13_s18   ;;  %s4407_s17 = sphi %s4448_s17, %s5827_s17   ;;  %s4403_s16 = sphi %s4446_s16, %s5826_s16   ;;  %s4399_s15 = sphi %s4444_s15, %s5825_s15   ;;  %s4395_s14 = sphi %s4442_s14, %s5824_s14   ;;  %s4391_s13 = sphi %s4440_s13, %s5823_s13   ;;  %s4387_s12 = sphi %s4438_s12, %s5822_s12  }
   0x5   : > { %p23_p0 = scmp.ge.s32.totalorder %s22_s19, 2  ;;  %s3556_s21 = sadd.s32 4294967295, %s4411_s18  }
   0x6   : > { %p112_p1 = scmp.ne.s32.totalorder %s4391_s13, %s4387_s12  ;;  %p113_p2 = scmp.eq.s32.totalorder %s3556_s21, 3 }
   0x7   : > { %s5829_s19 = smov (%p23_p0, %s22_s19), 0  ;;  %s5831_s20 = smov (!%p23_p0, %s25_s20), %s4407_s17 }
   0x8   : > { %s98_s22 = ssub.s32 %s4403_s16, %s5829_s19  ;;  %p27_p3 = scmp.ge.s32.totalorder %s5831_s20, 2 }
   0x9   : > { %p3560_p4 = scmp.ge.s32.totalorder %s4411_s18, 1  ;;  %p4484_p5 = por %p113_p2, %p112_p1 }
   0xa   : > { %p151_p6 = scmp.lt.s32.totalorder %s4411_s18, 5  ;;  %s5833_s20 = smov (%p27_p3, %s5831_s20), 0 }
   0xb   : > { %s97_s24 = ssub.s32 %s4407_s17, %s5833_s20  ;;  %s102_s26 = sadd.s32 1, %s4391_s13 }
   0xc   : > { %p152_p7 = pnand %p3560_p4, %p151_p6  ;;  %s99_s25 = sor.u32 %s98_s22, %s97_s24 }
   0xd   : > { %p100_p8 = scmp.eq.s32.totalorder %s99_s25, 0  ;;  %p174_p9 = scmp.lt.s32.totalorder (!%p152_p7), %s4399_s15, 1 }
   0xe   : > { %155 = sbr.rel (%p152_p7) target bundleno = 1076 (0x434), region = 32  ;;  %s4413_s29 = smov (!%p152_p7), 48  }
   0xf   : > { %s4495_s27 = scalar_select %p100_p8, %s4391_s13, %s102_s26  }
  0x10   : > { %s3564_s6 = smul.u32 (!%p152_p7), 192, %s4395_s14  ;;  %s4415_s30 = smov (!%p152_p7), 16  }
  0x13   : > { %v212_v0 = vld [vmem:[%s5816_s1] sm:$0xff]  ;;  %vm325_vm0 = vcmask 1043456   ;;  %v213_v2 = vld [vmem:[%s5816_s1 + $0x8] sm:$0xff]  ;;  %s175_s5 = scalar_select %p174_p9, %s4399_s15, 1  ;;  %v4515_v4 = vld [vmem:[%s5816_s1 + $0x10] sm:$0xff]  ;;  %vm292_vm1 = vcmask 31744  }
  0x14   : > { %v291_v1 = vrot.slane %v212_v0, 4  ;;  %3998 = vmatprep.subr.msk.mxu1 %vm325_vm0, %v212_v0  ;;  %v889_v3 = vrot.slane %v213_v2, 4  ;;  %vm249_vm2 = vcmask 1046528   ;;  %v1238_v8 = vrot.slane %v4515_v4, 4  ;;  %s3766_s8 = sshll.u32 (%p4484_p5), %s4395_s14, 1  ;;  %s3767_s9 = sshll.u32 (%p4484_p5), %s4399_s15, 4 }
  0x15   : > { %3999 = vmatpush3.msk.msra.mxu1 %vm325_vm0, %v212_v0  ;;  %s4294_s7 = smul.u32 432, %s175_s5  ;;  %vm652_vm3 = vcmask 1045504   ;;  %vm2291_vm4 = vcmask 130048   ;;  %vm2296_vm5 = vcmask 261120   ;;  %vm2301_vm6 = vcmask 392192   ;;  %s3455_s10 = sadd.s32 (%p4484_p5), %s3767_s9, %s3766_s8 }
  0x16   : > { %3972 = vmatprep.subr.msk.mxu0 %vm325_vm0, %v291_v1  ;;  %4050 = vmatprep.subr.msk.mxu1 %vm325_vm0, %v889_v3  ;;  %vm2306_vm7 = vcmask 523264   ;;  %s3768_s23 = sshll.u32 (%p4484_p5), %s3455_s10, 3 }
  0x17   : > { %3973 = vmatpush3.msk.msra.mxu0 %vm325_vm0, %v291_v1  ;;  %s178_s21 = scalar_lea.vmem %s5815_s0, %s4294_s7  ;;  %s4414_s7 = smov 32  }
  0x18   : > { %4024 = vmatprep.subr.msk.mxu0 %vm325_vm0, %v213_v2  ;;  %s4520_s22 = scalar_lea.vmem %s178_s21, %s3564_s6  ;;  %s171_s6 = sand.u32 1, %s4387_s12  }
  0x19   : > { %v4523_v5 = vld [vmem:[%s4520_s22] sm:$0xff]  ;;  %v4526_v6 = vld [vmem:[%s4520_s22 + $0x8] sm:$0xff]  ;;  %v4529_v7 = vld [vmem:[%s4520_s22 + $0x10] sm:$0x3] }
  0x1a   : > { %v250_v9 = vrot.slane %v4523_v5, 1  ;;  %v251_v10 = vrot.slane %v4526_v6, 1  ;;  %4000 = vmatprep.mubr.msk.f32.mxu1 %vm292_vm1, %v4523_v5  ;;  %v253_v11 = vrot.slane %v4529_v7, 1  ;;  %v4538_v12 = vld [vmem:[%s4520_s22 + $0x18] sm:$0xff]  ;;  %v4541_v13 = vld [vmem:[%s4520_s22 + $0x20] sm:$0xff]  ;;  %v4551_v17 = vld [vmem:[%s4520_s22 + $0x30] sm:$0xff] }
  0x1b   : > { %4001 = vmatmul.mubr.msk.f32.vlgmr.msra.gmra.mxu1 %vm292_vm1, %v4526_v6  ;;  %v255_v14 = vrot.slane %v4538_v12, 1  ;;  %v256_v15 = vrot.slane %v4541_v13, 1  ;;  %v4548_v16 = vld [vmem:[%s4520_s22 + $0x28] sm:$0x3]  ;;  %v4554_v18 = vld [vmem:[%s4520_s22 + $0x38] sm:$0xff]  ;;  %v260_v22 = vrot.slane %v4551_v17, 1 }
  0x1c   : > { %v252_v19 = vsel %vm249_vm2, %v250_v9, %v251_v10  ;;  %v254_v20 = vsel %vm249_vm2, %v251_v10, %v253_v11  ;;  %4003 = vmatprep.mubr.msk.f32.mxu1 %vm292_vm1, %v4538_v12  ;;  %v258_v21 = vrot.slane %v4548_v16, 1  ;;  %v4563_v23 = vld [vmem:[%s4520_s22 + $0x40] sm:$0x3]  ;;  %4051 = vmatpush3.msk.msra.mxu1 %vm325_vm0, %v889_v3  ;;  %v261_v25 = vrot.slane %v4554_v18, 1  ;;  %v4572_v26 = vld [vmem:[%s4520_s22 + $0x48] sm:$0xff]  ;;  %v4575_v27 = vld [vmem:[%s4520_s22 + $0x50] sm:$0xff] }
  0x1d   : > { %3974 = vmatprep.mubr.msk.f32.mxu0 %vm292_vm1, %v252_v19  ;;  %v4568_v24 = vsel %vm249_vm2, %v255_v14, %v256_v15  ;;  %4102 = vmatprep.subr.msk.mxu1 %vm325_vm0, %v1238_v8  ;;  %v263_v29 = vrot.slane %v4563_v23, 1  ;;  %v265_v31 = vrot.slane %v4572_v26, 1  ;;  %v266_v32 = vrot.slane %v4575_v27, 1  ;;  %v4596_v33 = vld [vmem:[%s4520_s22 + $0x58] sm:$0x3]  ;;  %v4603_v34 = vld [vmem:[%s4520_s22 + $0x60] sm:$0xff] }
  0x1e   : > { %3975 = vmatmul.mubr.msk.f32.vlgmr.msra.gmra.mxu0 %vm292_vm1, %v254_v20  ;;  %v4585_v28 = vsel %vm249_vm2, %v256_v15, %v258_v21  ;;  %v4591_v30 = vsel %vm249_vm2, %v260_v22, %v261_v25  ;;  %v4606_v35 = vld [vmem:[%s4520_s22 + $0x68] sm:$0xff]  ;;  %v268_v37 = vrot.slane %v4596_v33, 1  ;;  %v270_v39 = vrot.slane %v4603_v34, 1  ;;  %v4624_v41 = vld [vmem:[%s4520_s22 + $0x70] sm:$0x3]  ;;  %v4629_v42 = vld [vmem:[%s4520_s22 + $0x78] sm:$0xff] }
  0x1f   : > { %4025 = vmatpush3.msk.msra.mxu0 %vm325_vm0, %v213_v2  ;;  %3977 = vmatprep.mubr.msk.f32.mxu0 %vm292_vm1, %v4568_v24  ;;  %v4613_v36 = vsel %vm249_vm2, %v261_v25, %v263_v29  ;;  %v4619_v38 = vsel %vm249_vm2, %v265_v31, %v266_v32  ;;  %v271_v40 = vrot.slane %v4606_v35, 1  ;;  %v4632_v43 = vld [vmem:[%s4520_s22 + $0x80] sm:$0xff]  ;;  %v273_v45 = vrot.slane %v4624_v41, 1  ;;  %v4650_v49 = vld [vmem:[%s4520_s22 + $0x88] sm:$0x3]  ;;  %v4655_v50 = vld [vmem:[%s4520_s22 + $0x90] sm:$0xff] }
  0x20   : > { %4004 = vmatmul.mubr.msk.f32.gmra.mxu1 %vm292_vm1, %v4541_v13  ;;  %4076 = vmatprep.subr.msk.mxu0 %vm325_vm0, %v4515_v4  ;;  %v4639_v44 = vsel %vm249_vm2, %v266_v32, %v268_v37  ;;  %v275_v47 = vrot.slane %v4629_v42, 1  ;;  %v276_v48 = vrot.slane %v4632_v43, 1  ;;  %v4658_v51 = vld [vmem:[%s4520_s22 + $0x98] sm:$0xff]  ;;  %v278_v53 = vrot.slane %v4650_v49, 1  ;;  %v4669_v54 = vld [vmem:[%s4520_s22 + $0xa0] sm:$0x3] }
  0x21   : > { %4006 = vmatprep.mubr.msk.f32.mxu1 %vm292_vm1, %v4551_v17  ;;  %v4645_v46 = vsel %vm249_vm2, %v270_v39, %v271_v40  ;;  %v4665_v52 = vsel %vm249_vm2, %v271_v40, %v273_v45  ;;  %v280_v56 = vrot.slane %v4655_v50, 1  ;;  %v281_v57 = vrot.slane %v4658_v51, 1  ;;  %v4679_v58 = vld [vmem:[%s4520_s22 + $0xa8] sm:$0xff]  ;;  %v4682_v59 = vld [vmem:[%s4520_s22 + $0xd0] sm:$0x3]  ;;  %v4693_v62 = vld [vmem:[%s4520_s22 + $0xd8] sm:$0xff] }
  0x22   : > { %3978 = vmatmul.mubr.msk.f32.gmra.mxu0 %vm292_vm1, %v4585_v28  ;;  %v4674_v55 = vsel %vm249_vm2, %v275_v47, %v276_v48  ;;  %v4687_v60 = vld [vmem:[%s4520_s22 + $0xb0] sm:$0xff]  ;;  %v4690_v61 = vld [vmem:[%s4520_s22 + $0xc8] sm:$0xff]  ;;  %v4699_v0 = vld [vmem:[%s4520_s22 + $0xe0] sm:$0xff]  ;;  %v4704_v1 = vsel %vm249_vm2, %v276_v48, %v278_v53  ;;  %v283_v2 = vrot.slane %v4669_v54, 1  ;;  %v1063_v3 = vrot.slane %v4682_v59, 1 }
  0x23   : > { %3980 = vmatprep.mubr.msk.f32.mxu0 %vm292_vm1, %v4591_v30  ;;  %v1061_v63 = vrot.slane %v4690_v61, 1  ;;  %v211_v9 = vld [vmem:[%s4520_s22 + $0xe8] sm:$0x3]  ;;  %v4712_v10 = vsel %vm249_vm2, %v280_v56, %v281_v57  ;;  %v285_v11 = vrot.slane %v4679_v58, 1  ;;  %v286_v14 = vrot.slane %v4687_v60, 1 }
  0x24   : > { %4007 = vmatmul.mubr.msk.f32.gmra.mxu1 %vm292_vm1, %v4554_v18  ;;  %v4717_v15 = vld [vmem:[%s4520_s22 + $0xb8] sm:$0x3]  ;;  %v1577_v19 = vrot.slane %v4693_v62, 1  ;;  %v1578_v21 = vrot.slane %v4699_v0, 1  ;;  %v1750_v22 = vrot.slane %v4693_v62, 2  ;;  %v1751_v25 = vrot.slane %v4699_v0, 2 }
  0x25   : > { %4009 = vmatprep.mubr.msk.f32.mxu1 %vm292_vm1, %v4572_v26  ;;  %v4725_v20 = vsel %vm249_vm2, %v1061_v63, %v1063_v3  ;;  %v1580_v29 = vrot.slane %v211_v9, 1  ;;  %v4735_v31 = vsel %vm249_vm2, %v281_v57, %v283_v2  ;;  %v288_v32 = vrot.slane %v4717_v15, 1 }
  0x26   : > { %3981 = vmatmul.mubr.msk.f32.gmra.mxu0 %vm292_vm1, %v4613_v36  ;;  %v4739_v37 = vsel %vm249_vm2, %v1577_v19, %v1578_v21  ;;  %v4744_v39 = vsel %vm249_vm2, %v285_v11, %v286_v14  ;;  %v653_v40 = vrot.slane %v4523_v5, 2  ;;  %v654_v45 = vrot.slane %v4526_v6, 2  ;;  %v4767_v6 = vld [vmem:[%s5816_s1 + $0x18] sm:$0xff] }
  0x27   : > { %3983 = vmatprep.mubr.msk.f32.mxu0 %vm292_vm1, %v4619_v38  ;;  %v4749_v47 = vsel %vm249_vm2, %v1578_v21, %v1580_v29  ;;  %v4756_v48 = vsel %vm652_vm3, %v1750_v22, %v1751_v25  ;;  %v656_v53 = vrot.slane %v4529_v7, 2  ;;  %v4762_v5 = vsel %vm249_vm2, %v286_v14, %v288_v32 }
  0x28   : > { %4010 = vmatmul.mubr.msk.f32.gmra.mxu1 %vm292_vm1, %v4575_v27  ;;  %v1753_v56 = vrot.slane %v211_v9, 2  ;;  %v655_v57 = vsel %vm652_vm3, %v653_v40, %v654_v45  ;;  %v658_v2 = vrot.slane %v4538_v12, 2  ;;  %v659_v7 = vrot.slane %v4541_v13, 2 }
  0x29   : > { %4012 = vmatprep.mubr.msk.f32.mxu1 %vm292_vm1, %v4603_v34  ;;  %v1582_v9 = vrot.slane %v4767_v6, 4  ;;  %v657_v11 = vsel %vm652_vm3, %v654_v45, %v656_v53  ;;  %v661_v14 = vrot.slane %v4548_v16, 2  ;;  %v664_v21 = vrot.slane %v4554_v18, 2 }
  0x2a   : > { %3984 = vmatmul.mubr.msk.f32.gmra.mxu0 %vm292_vm1, %v4639_v44  ;;  %v4777_v3 = vsel %vm652_vm3, %v1751_v25, %v1753_v56  ;;  %v4788_v19 = vsel %vm652_vm3, %v658_v2, %v659_v7  ;;  %v666_v16 = vrot.slane %v4563_v23, 2  ;;  %v668_v22 = vrot.slane %v4572_v26, 2 }
  0x2b   : > { %3986 = vmatprep.mubr.msk.f32.mxu0 %vm292_vm1, %v4645_v46  ;;  %v669_v25 = vrot.slane %v4575_v27, 2  ;;  %v671_v23 = vrot.slane %v4596_v33, 2  ;;  %v673_v32 = vrot.slane %v4603_v34, 2  ;;  %v674_v40 = vrot.slane %v4606_v35, 2 }
  0x2c   : > { %4013 = vmatmul.mubr.msk.f32.gmra.mxu1 %vm292_vm1, %v4606_v35  ;;  %v676_v45 = vrot.slane %v4624_v41, 2  ;;  %v678_v56 = vrot.slane %v4629_v42, 2  ;;  %v681_v2 = vrot.slane %v4650_v49, 2 }
  0x2d   : > { %4015 = vmatprep.mubr.msk.f32.mxu1 %vm292_vm1, %v4629_v42  ;;  %v4828_v29 = vsel %vm652_vm3, %v668_v22, %v669_v25  ;;  %v4839_v33 = vsel %vm652_vm3, %v669_v25, %v671_v23  ;;  %v4845_v53 = vsel %vm652_vm3, %v673_v32, %v674_v40  ;;  %v689_v22 = vrot.slane %v4687_v60, 2  ;;  %v4888_v25 = vld [vmem:[%s4520_s22 + $0xc0] sm:$0xff]  ;;  %s3457_s22 = scalar_lea.vmem (%p4484_p5), %s5818_s3, %s3768_s23 }
  0x2e   : > { %3987 = vmatmul.mubr.msk.f32.gmra.mxu0 %vm292_vm1, %v4665_v52  ;;  %v4856_v41 = vsel %vm652_vm3, %v674_v40, %v676_v45  ;;  %v691_v23 = vrot.slane %v4717_v15, 2  ;;  %v216_v15 = vld [vmem:[%s5816_s1 + $0x20] sm:$0xf] }
  0x2f   : > { %3989 = vmatprep.mubr.msk.f32.mxu0 %vm292_vm1, %v4674_v55 }
  0x30   : > { %4016 = vmatmul.mubr.msk.f32.gmra.mxu1 %vm292_vm1, %v4632_v43  ;;  %v4908_v40 = vsel %vm652_vm3, %v689_v22, %v691_v23 }
  0x31   : > { %4018 = vmatprep.mubr.msk.f32.mxu1 %vm292_vm1, %v4655_v50 }
  0x32   : > { %3990 = vmatmul.mubr.msk.f32.gmra.mxu0 %vm292_vm1, %v4704_v1 }
  0x33   : > { %3992 = vmatprep.mubr.msk.f32.mxu0 %vm292_vm1, %v4712_v10 }
  0x34   : > { %4019 = vmatmul.mubr.msk.f32.gmra.mxu1 %vm292_vm1, %v4658_v51 }
  0x35   : > { %4021 = vmatprep.mubr.msk.f32.mxu1 %vm292_vm1, %v4679_v58 }
  0x36   : > { %3993 = vmatmul.mubr.msk.f32.gmra.mxu0 %vm292_vm1, %v4735_v31 }
  0x37   : > { %3995 = vmatprep.mubr.msk.f32.mxu0 %vm292_vm1, %v4744_v39 }
  0x38   : > { %4022 = vmatmul.mubr.msk.f32.gmra.mxu1 %vm292_vm1, %v4687_v60 }
  0x39   : > { %4052 = vmatprep.mubr.msk.f32.mxu1 %vm292_vm1, %v4538_v12  ;;  %v663_v12 = vrot.slane %v4551_v17, 2 }
  0x3a   : > { %3996 = vmatmul.mubr.msk.f32.gmra.mxu0 %vm292_vm1, %v4762_v5 }
  0x3b   : > { %4026 = vmatprep.mubr.msk.f32.mxu0 %vm292_vm1, %v655_v57  ;;  %v679_v57 = vrot.slane %v4632_v43, 2 }
  0x3c   : > { %4053 = vmatmul.mubr.msk.f32.vlgmr.msra.gmra.mxu1 %vm292_vm1, %v4541_v13  ;;  %v662_v13 = vsel %vm652_vm3, %v659_v7, %v661_v14  ;;  %v684_v14 = vrot.slane %v4658_v51, 2 }
  0x3d   : > { %4055 = vmatprep.mubr.msk.f32.mxu1 %vm292_vm1, %v4551_v17  ;;  %4103 = vmatpush3.msk.msra.mxu1 %vm325_vm0, %v1238_v8  ;;  %v4810_v8 = vsel %vm652_vm3, %v663_v12, %v664_v21  ;;  %v4862_v7 = vsel %vm652_vm3, %v678_v56, %v679_v57  ;;  %v4873_v49 = vsel %vm652_vm3, %v679_v57, %v681_v2  ;;  %v686_v12 = vrot.slane %v4669_v54, 2 }
  0x3e   : > { %4027 = vmatmul.mubr.msk.f32.vlgmr.msra.gmra.mxu0 %vm292_vm1, %v657_v11  ;;  %4154 = vmatprep.subr.msk.mxu1 %vm325_vm0, %v1582_v9  ;;  %v683_v11 = vrot.slane %v4655_v50, 2 }
  0x3f   : > { %4077 = vmatpush3.msk.msra.mxu0 %vm325_vm0, %v4515_v4  ;;  %4029 = vmatprep.mubr.msk.f32.mxu0 %vm292_vm1, %v4788_v19  ;;  %v4822_v4 = vsel %vm652_vm3, %v664_v21, %v666_v16  ;;  %v688_v16 = vrot.slane %v4679_v58, 2  ;;  %v4893_v54 = vsel %vm652_vm3, %v684_v14, %v686_v12 }
  0x40   : > { %4056 = vmatmul.mubr.msk.f32.gmra.mxu1 %vm292_vm1, %v4554_v18  ;;  %4128 = vmatprep.subr.msk.mxu0 %vm325_vm0, %v4767_v6  ;;  %v4879_v21 = vsel %vm652_vm3, %v683_v11, %v684_v14 }
  0x41   : > { %4058 = vmatprep.mubr.msk.f32.mxu1 %vm292_vm1, %v4572_v26  ;;  %v4899_v32 = vsel %vm652_vm3, %v688_v16, %v689_v22 }
  0x42   : > { %4030 = vmatmul.mubr.msk.f32.gmra.mxu0 %vm292_vm1, %v662_v13 }
  0x43   : > { %4032 = vmatprep.mubr.msk.f32.mxu0 %vm292_vm1, %v4810_v8 }
  0x44   : > { %4059 = vmatmul.mubr.msk.f32.gmra.mxu1 %vm292_vm1, %v4575_v27 }
  0x45   : > { %4061 = vmatprep.mubr.msk.f32.mxu1 %vm292_vm1, %v4603_v34 }
  0x46   : > { %4033 = vmatmul.mubr.msk.f32.gmra.mxu0 %vm292_vm1, %v4822_v4 }
  0x47   : > { %4035 = vmatprep.mubr.msk.f32.mxu0 %vm292_vm1, %v4828_v29 }
  0x48   : > { %4062 = vmatmul.mubr.msk.f32.gmra.mxu1 %vm292_vm1, %v4606_v35 }
  0x49   : > { %4064 = vmatprep.mubr.msk.f32.mxu1 %vm292_vm1, %v4629_v42 }
  0x4a   : > { %4036 = vmatmul.mubr.msk.f32.gmra.mxu0 %vm292_vm1, %v4839_v33 }
  0x4b   : > { %4038 = vmatprep.mubr.msk.f32.mxu0 %vm292_vm1, %v4845_v53 }
  0x4c   : > { %4065 = vmatmul.mubr.msk.f32.gmra.mxu1 %vm292_vm1, %v4632_v43 }
  0x4d   : > { %4067 = vmatprep.mubr.msk.f32.mxu1 %vm292_vm1, %v4655_v50 }
  0x4e   : > { %4039 = vmatmul.mubr.msk.f32.gmra.mxu0 %vm292_vm1, %v4856_v41 }
  0x4f   : > { %4041 = vmatprep.mubr.msk.f32.mxu0 %vm292_vm1, %v4862_v7 }
  0x50   : > { %4068 = vmatmul.mubr.msk.f32.gmra.mxu1 %vm292_vm1, %v4658_v51 }
  0x51   : > { %4070 = vmatprep.mubr.msk.f32.mxu1 %vm292_vm1, %v4679_v58 }
  0x52   : > { %4042 = vmatmul.mubr.msk.f32.gmra.mxu0 %vm292_vm1, %v4873_v49 }
  0x53   : > { %4044 = vmatprep.mubr.msk.f32.mxu0 %vm292_vm1, %v4879_v21 }
  0x54   : > { %4071 = vmatmul.mubr.msk.f32.gmra.mxu1 %vm292_vm1, %v4687_v60 }
  0x55   : > { %4073 = vmatprep.mubr.msk.f32.mxu1 %vm292_vm1, %v4888_v25 }
  0x56   : > { %4045 = vmatmul.mubr.msk.f32.gmra.mxu0 %vm292_vm1, %v4893_v54 }
  0x57   : > { %4047 = vmatprep.mubr.msk.f32.mxu0 %vm292_vm1, %v4899_v32 }
  0x58   : > { %4074 = vmatmul.mubr.msk.f32.gmra.mxu1 %vm292_vm1, %v4690_v61 }
  0x59   : > { %4104 = vmatprep.mubr.msk.f32.mxu1 %vm292_vm1, %v4788_v19 }
  0x5a   : > { %4048 = vmatmul.mubr.msk.f32.gmra.mxu0 %vm292_vm1, %v4908_v40 }
  0x5b   : > { %4078 = vmatprep.mubr.msk.f32.mxu0 %vm292_vm1, %v4568_v24  ;;  %v1233_v24 = vrot.slane %v4888_v25, 2 }
  0x5c   : > { %4105 = vmatmul.mubr.msk.f32.vlgmr.msra.gmra.mxu1 %vm292_vm1, %v662_v13 }
  0x5d   : > { %4107 = vmatprep.mubr.msk.f32.mxu1 %vm292_vm1, %v4810_v8  ;;  %4155 = vmatpush3.msk.msra.mxu1 %vm325_vm0, %v1582_v9  ;;  %v1236_v9 = vrot.slane %v4682_v59, 2 }
  0x5e   : > { %4079 = vmatmul.mubr.msk.f32.vlgmr.msra.gmra.mxu0 %vm292_vm1, %v4585_v28  ;;  %v1234_v28 = vrot.slane %v4690_v61, 2 }
  0x5f   : > { %4129 = vmatpush3.msk.msra.mxu0 %vm325_vm0, %v4767_v6  ;;  %4081 = vmatprep.mubr.msk.f32.mxu0 %vm292_vm1, %v4591_v30  ;;  %v1060_v6 = vrot.slane %v4888_v25, 1 }
  0x60   : > { %4108 = vmatmul.mubr.msk.f32.gmra.mxu1 %vm292_vm1, %v4822_v4  ;;  %4180 = vmatprep.subr.msk.mxu0 %vm325_vm0, %v216_v15  ;;  %v1235_v19 = vsel %vm652_vm3, %v1233_v24, %v1234_v28  ;;  %v1237_v45 = vsel %vm652_vm3, %v1234_v28, %v1236_v9 }
  0x61   : > { %4110 = vmatprep.mubr.msk.f32.mxu1 %vm292_vm1, %v4828_v29  ;;  %v1062_v13 = vsel %vm249_vm2, %v1060_v6, %v1061_v63 }
  0x62   : > { %4082 = vmatmul.mubr.msk.f32.gmra.mxu0 %vm292_vm1, %v4613_v36 }
  0x63   : > { %4084 = vmatprep.mubr.msk.f32.mxu0 %vm292_vm1, %v4619_v38 }
  0x64   : > { %4111 = vmatmul.mubr.msk.f32.gmra.mxu1 %vm292_vm1, %v4839_v33 }
  0x65   : > { %4113 = vmatprep.mubr.msk.f32.mxu1 %vm292_vm1, %v4845_v53 }
  0x66   : > { %4085 = vmatmul.mubr.msk.f32.gmra.mxu0 %vm292_vm1, %v4639_v44 }
  0x67   : > { %4087 = vmatprep.mubr.msk.f32.mxu0 %vm292_vm1, %v4645_v46 }
  0x68   : > { %4114 = vmatmul.mubr.msk.f32.gmra.mxu1 %vm292_vm1, %v4856_v41 }
  0x69   : > { %4116 = vmatprep.mubr.msk.f32.mxu1 %vm292_vm1, %v4862_v7 }
  0x6a   : > { %4088 = vmatmul.mubr.msk.f32.gmra.mxu0 %vm292_vm1, %v4665_v52 }
  0x6b   : > { %4090 = vmatprep.mubr.msk.f32.mxu0 %vm292_vm1, %v4674_v55 }
  0x6c   : > { %4117 = vmatmul.mubr.msk.f32.gmra.mxu1 %vm292_vm1, %v4873_v49 }
  0x6d   : > { %4119 = vmatprep.mubr.msk.f32.mxu1 %vm292_vm1, %v4879_v21 }
  0x6e   : > { %4091 = vmatmul.mubr.msk.f32.gmra.mxu0 %vm292_vm1, %v4704_v1 }
  0x6f   : > { %4093 = vmatprep.mubr.msk.f32.mxu0 %vm292_vm1, %v4712_v10 }
  0x70   : > { %4120 = vmatmul.mubr.msk.f32.gmra.mxu1 %vm292_vm1, %v4893_v54 }
  0x71   : > { %4122 = vmatprep.mubr.msk.f32.mxu1 %vm292_vm1, %v4899_v32 }
  0x72   : > { %4094 = vmatmul.mubr.msk.f32.gmra.mxu0 %vm292_vm1, %v4735_v31 }
  0x73   : > { %4096 = vmatprep.mubr.msk.f32.mxu0 %vm292_vm1, %v4744_v39 }
  0x74   : > { %4123 = vmatmul.mubr.msk.f32.gmra.mxu1 %vm292_vm1, %v4908_v40 }
  0x75   : > { %4125 = vmatprep.mubr.msk.f32.mxu1 %vm292_vm1, %v1235_v19 }
  0x76   : > { %4097 = vmatmul.mubr.msk.f32.gmra.mxu0 %vm292_vm1, %v4762_v5 }
  0x77   : > { %4099 = vmatprep.mubr.msk.f32.mxu0 %vm292_vm1, %v1062_v13 }
  0x78   : > { %4126 = vmatmul.mubr.msk.f32.gmra.mxu1 %vm292_vm1, %v1237_v45 }
  0x79   : > { %4156 = vmatprep.mubr.msk.f32.mxu1 %vm292_vm1, %v4591_v30 }
  0x7a   : > { %4100 = vmatmul.mubr.msk.f32.gmra.mxu0 %vm292_vm1, %v4725_v20 }
  0x7b   : > { %4130 = vmatprep.mubr.msk.f32.mxu0 %vm292_vm1, %v4551_v17 }
  0x7c   : > { %4157 = vmatmul.mubr.msk.f32.vlgmr.msra.gmra.mxu1 %vm292_vm1, %v4613_v36 }
  0x7d   : > { %4159 = vmatprep.mubr.msk.f32.mxu1 %vm292_vm1, %v4619_v38 }
  0x7e   : > { %4131 = vmatmul.mubr.msk.f32.vlgmr.msra.gmra.mxu0 %vm292_vm1, %v4554_v18 }
  0x7f   : > { %4181 = vmatpush3.msk.msra.mxu0 %vm325_vm0, %v216_v15  ;;  %4133 = vmatprep.mubr.msk.f32.mxu0 %vm292_vm1, %v4572_v26 }
  0x80   : > { %4160 = vmatmul.mubr.msk.f32.gmra.mxu1 %vm292_vm1, %v4639_v44 }
  0x81   : > { %4162 = vmatprep.mubr.msk.f32.mxu1 %vm292_vm1, %v4645_v46 }
  0x82   : > { %4134 = vmatmul.mubr.msk.f32.gmra.mxu0 %vm292_vm1, %v4575_v27 }
  0x83   : > { %4136 = vmatprep.mubr.msk.f32.mxu0 %vm292_vm1, %v4603_v34 }
  0x84   : > { %4163 = vmatmul.mubr.msk.f32.gmra.mxu1 %vm292_vm1, %v4665_v52 }
  0x85   : > { %4165 = vmatprep.mubr.msk.f32.mxu1 %vm292_vm1, %v4674_v55 }
  0x86   : > { %4137 = vmatmul.mubr.msk.f32.gmra.mxu0 %vm292_vm1, %v4606_v35 }
  0x87   : > { %4139 = vmatprep.mubr.msk.f32.mxu0 %vm292_vm1, %v4629_v42 }
  0x88   : > { %4166 = vmatmul.mubr.msk.f32.gmra.mxu1 %vm292_vm1, %v4704_v1 }
  0x89   : > { %4168 = vmatprep.mubr.msk.f32.mxu1 %vm292_vm1, %v4712_v10 }
  0x8a   : > { %4140 = vmatmul.mubr.msk.f32.gmra.mxu0 %vm292_vm1, %v4632_v43 }
  0x8b   : > { %4142 = vmatprep.mubr.msk.f32.mxu0 %vm292_vm1, %v4655_v50 }
  0x8c   : > { %4169 = vmatmul.mubr.msk.f32.gmra.mxu1 %vm292_vm1, %v4735_v31 }
  0x8d   : > { %4171 = vmatprep.mubr.msk.f32.mxu1 %vm292_vm1, %v4744_v39 }
  0x8e   : > { %4143 = vmatmul.mubr.msk.f32.gmra.mxu0 %vm292_vm1, %v4658_v51 }
  0x8f   : > { %4145 = vmatprep.mubr.msk.f32.mxu0 %vm292_vm1, %v4679_v58 }
  0x90   : > { %4172 = vmatmul.mubr.msk.f32.gmra.mxu1 %vm292_vm1, %v4762_v5 }
  0x91   : > { %4174 = vmatprep.mubr.msk.f32.mxu1 %vm292_vm1, %v1062_v13 }
  0x92   : > { %4146 = vmatmul.mubr.msk.f32.gmra.mxu0 %vm292_vm1, %v4687_v60 }
  0x93   : > { %4148 = vmatprep.mubr.msk.f32.mxu0 %vm292_vm1, %v4888_v25 }
  0x94   : > { %4175 = vmatmul.mubr.msk.f32.gmra.mxu1 %vm292_vm1, %v4725_v20 }
  0x95   : > { %4177 = vmatprep.mubr.msk.f32.mxu1 %vm292_vm1, %v4739_v37 }
  0x96   : > { %4149 = vmatmul.mubr.msk.f32.gmra.mxu0 %vm292_vm1, %v4690_v61 }
  0x97   : > { %4151 = vmatprep.mubr.msk.f32.mxu0 %vm292_vm1, %v4693_v62 }
  0x98   : > { %4178 = vmatmul.mubr.msk.f32.gmra.mxu1 %vm292_vm1, %v4749_v47 }
  0x9a   : > { %4152 = vmatmul.mubr.msk.f32.gmra.mxu0 %vm292_vm1, %v4699_v0 }
  0x9b   : > { %4182 = vmatprep.mubr.msk.f32.mxu0 %vm292_vm1, %v4810_v8 }
  0x9e   : > { %4183 = vmatmul.mubr.msk.f32.vlgmr.msra.gmra.mxu0 %vm292_vm1, %v4822_v4 }
  0x9f   : > { %4185 = vmatprep.mubr.msk.f32.mxu0 %vm292_vm1, %v4828_v29 }
  0xa2   : > { %4186 = vmatmul.mubr.msk.f32.gmra.mxu0 %vm292_vm1, %v4839_v33 }
  0xa3   : > { %4188 = vmatprep.mubr.msk.f32.mxu0 %vm292_vm1, %v4845_v53 }
  0xa6   : > { %4189 = vmatmul.mubr.msk.f32.gmra.mxu0 %vm292_vm1, %v4856_v41 }
  0xa7   : > { %4191 = vmatprep.mubr.msk.f32.mxu0 %vm292_vm1, %v4862_v7 }
  0xaa   : > { %4192 = vmatmul.mubr.msk.f32.gmra.mxu0 %vm292_vm1, %v4873_v49 }
  0xab   : > { %4194 = vmatprep.mubr.msk.f32.mxu0 %vm292_vm1, %v4879_v21 }
  0xae   : > { %4195 = vmatmul.mubr.msk.f32.gmra.mxu0 %vm292_vm1, %v4893_v54 }
  0xaf   : > { %4197 = vmatprep.mubr.msk.f32.mxu0 %vm292_vm1, %v4899_v32 }
  0xb2   : > { %4198 = vmatmul.mubr.msk.f32.gmra.mxu0 %vm292_vm1, %v4908_v40 }
  0xb3   : > { %4200 = vmatprep.mubr.msk.f32.mxu0 %vm292_vm1, %v1235_v19 }
  0xb6   : > { %4201 = vmatmul.mubr.msk.f32.gmra.mxu0 %vm292_vm1, %v1237_v45 }
  0xb7   : > { %4203 = vmatprep.mubr.msk.f32.mxu0 %vm292_vm1, %v4756_v48 }
  0xba   : > { %4204 = vmatmul.mubr.msk.f32.gmra.mxu0 %vm292_vm1, %v4777_v3 }
  0xdb   : > { %v4002_v17 = vpop.f32.mrf.mxu1 }
  0xdd   : > { %v573_v18 = vpop.f32.mrf.mxu1 }
  0xde   : > { %v3976_v26 = vpop.f32.mrf.mxu0 }
  0xdf   : > { %v579_v27 = vadd.f32 %v4002_v17, %v3976_v26 }
  0xe0   : > { %v394_v30 = vpop.f32.mrf.mxu0  ;;  %v4005_v34 = vpop.f32.mrf.mxu1 }
  0xe1   : > { %v574_v35 = vadd.f32 %v573_v18, %v394_v30 }
  0xe2   : > { %v3979_v36 = vpop.f32.mrf.mxu0  ;;  %v583_v38 = vpop.f32.mrf.mxu1 }
  0xe3   : > { %v589_v42 = vadd.f32 %v4005_v34, %v3979_v36 }
  0xe4   : > { %v404_v43 = vpop.f32.mrf.mxu0  ;;  %v4008_v44 = vpop.f32.mrf.mxu1 }
  0xe5   : > { %v584_v46 = vadd.f32 %v583_v38, %v404_v43 }
  0xe6   : > { %v3982_v50 = vpop.f32.mrf.mxu0  ;;  %v593_v51 = vpop.f32.mrf.mxu1 }
  0xe7   : > { %v599_v52 = vadd.f32 %v4008_v44, %v3982_v50 }
  0xe8   : > { %v414_v55 = vpop.f32.mrf.mxu0  ;;  %v4011_v58 = vpop.f32.mrf.mxu1 }
  0xe9   : > { %v594_v59 = vadd.f32 %v593_v51, %v414_v55 }
  0xea   : > { %v3985_v60 = vpop.f32.mrf.mxu0  ;;  %v603_v61 = vpop.f32.mrf.mxu1 }
  0xeb   : > { %v609_v62 = vadd.f32 %v4011_v58, %v3985_v60 }
  0xec   : > { %v424_v63 = vpop.f32.mrf.mxu0  ;;  %v4014_v0 = vpop.f32.mrf.mxu1 }
  0xed   : > { %v604_v1 = vadd.f32 %v603_v61, %v424_v63 }
  0xee   : > { %v3988_v10 = vpop.f32.mrf.mxu0  ;;  %v613_v20 = vpop.f32.mrf.mxu1 }
  0xef   : > { %v619_v31 = vadd.f32 %v4014_v0, %v3988_v10 }
  0xf0   : > { %v434_v37 = vpop.f32.mrf.mxu0  ;;  %v4017_v39 = vpop.f32.mrf.mxu1 }
  0xf1   : > { %v614_v47 = vadd.f32 %v613_v20, %v434_v37 }
  0xf2   : > { %v3991_v48 = vpop.f32.mrf.mxu0  ;;  %v623_v5 = vpop.f32.mrf.mxu1 }
  0xf3   : > { %v629_v3 = vadd.f32 %v4017_v39, %v3991_v48 }
  0xf4   : > { %v444_v8 = vpop.f32.mrf.mxu0  ;;  %v4020_v4 = vpop.f32.mrf.mxu1 }
  0xf5   : > { %v624_v29 = vadd.f32 %v623_v5, %v444_v8 }
  0xf6   : > { %v3994_v33 = vpop.f32.mrf.mxu0  ;;  %v633_v53 = vpop.f32.mrf.mxu1 }
  0xf7   : > { %v639_v56 = vadd.f32 %v4020_v4, %v3994_v33 }
  0xf8   : > { %v454_v57 = vpop.f32.mrf.mxu0  ;;  %v4023_v41 = vpop.f32.mrf.mxu1 }
  0xf9   : > { %v634_v2 = vadd.f32 %v633_v53, %v454_v57 }
  0xfa   : > { %v3997_v7 = vpop.f32.mrf.mxu0  ;;  %v643_v11 = vpop.f32.mrf.mxu1 }
  0xfb   : > { %v649_v14 = vadd.f32 %v4023_v41, %v3997_v7 }
  0xfc   : > { %v464_v49 = vpop.f32.mrf.mxu0  ;;  %v5086_v12 = vpop.f32.mrf.mxu1 }
  0xfd   : > { %v644_v21 = vadd.f32 %v643_v11, %v464_v49 }
  0xfe   : > { %v4028_v16 = vpop.f32.mrf.mxu0  ;;  %v5088_v22 = vpop.f32.mrf.mxu1 }
  0xff   : > { %v5090_v25 = vadd.f32 %v4028_v16, %v579_v27 }
 0x100   : > { %v794_v54 = vpop.f32.mrf.mxu0  ;;  %v5092_v23 = vpop.f32.mrf.mxu1 }
 0x101   : > { %v5094_v32 = vadd.f32 %v794_v54, %v574_v35 }
 0x102   : > { %v4031_v40 = vpop.f32.mrf.mxu0  ;;  %v5096_v15 = vpop.f32.mrf.mxu1 }
 0x103   : > { %v5098_v24 = vadd.f32 %v4031_v40, %v589_v42 }
 0x104   : > { %v804_v28 = vpop.f32.mrf.mxu0  ;;  %v4060_v6 = vpop.f32.mrf.mxu1 }
 0x105   : > { %v5100_v9 = vadd.f32 %v804_v28, %v584_v46 }
 0x106   : > { %v4034_v19 = vpop.f32.mrf.mxu0  ;;  %v984_v13 = vpop.f32.mrf.mxu1 }
 0x107   : > { %v878_v45 = vadd.f32 %v4034_v19, %v599_v52 }
 0x108   : > { %v814_v17 = vpop.f32.mrf.mxu0  ;;  %v4063_v18 = vpop.f32.mrf.mxu1 }
 0x109   : > { %v877_v26 = vadd.f32 %v814_v17, %v594_v59  ;;  %v1048_v27 = vadd.f32 %v4060_v6, %v878_v45 }
 0x10a   : > { %v4037_v30 = vpop.f32.mrf.mxu0  ;;  %v994_v34 = vpop.f32.mrf.mxu1 }
 0x10b   : > { %v880_v35 = vadd.f32 %v4037_v30, %v609_v62  ;;  %v1047_v36 = vadd.f32 %v984_v13, %v877_v26 }
 0x10c   : > { %v824_v38 = vpop.f32.mrf.mxu0  ;;  %v4066_v43 = vpop.f32.mrf.mxu1 }
 0x10d   : > { %v879_v44 = vadd.f32 %v824_v38, %v604_v1  ;;  %v1050_v42 = vadd.f32 %v4063_v18, %v880_v35 }
 0x10e   : > { %v4040_v50 = vpop.f32.mrf.mxu0  ;;  %v1004_v51 = vpop.f32.mrf.mxu1 }
 0x10f   : > { %v882_v55 = vadd.f32 %v4040_v50, %v619_v31  ;;  %v1049_v46 = vadd.f32 %v994_v34, %v879_v44 }
 0x110   : > { %v834_v58 = vpop.f32.mrf.mxu0  ;;  %v4069_v60 = vpop.f32.mrf.mxu1 }
 0x111   : > { %v881_v61 = vadd.f32 %v834_v58, %v614_v47  ;;  %v1052_v52 = vadd.f32 %v4066_v43, %v882_v55 }
 0x112   : > { %v4043_v63 = vpop.f32.mrf.mxu0  ;;  %v1014_v0 = vpop.f32.mrf.mxu1 }
 0x113   : > { %v884_v59 = vadd.f32 %v4043_v63, %v629_v3  ;;  %v1051_v10 = vadd.f32 %v1004_v51, %v881_v61 }
 0x114   : > { %v844_v20 = vpop.f32.mrf.mxu0  ;;  %v4072_v37 = vpop.f32.mrf.mxu1 }
 0x115   : > { %v883_v62 = vadd.f32 %v844_v20, %v624_v29  ;;  %v1054_v39 = vadd.f32 %v4069_v60, %v884_v59 }
 0x116   : > { %v4046_v48 = vpop.f32.mrf.mxu0  ;;  %v1024_v5 = vpop.f32.mrf.mxu1 }
 0x117   : > { %v886_v1 = vadd.f32 %v4046_v48, %v639_v56  ;;  %v1053_v8 = vadd.f32 %v1014_v0, %v883_v62 }
 0x118   : > { %v854_v4 = vpop.f32.mrf.mxu0  ;;  %v4075_v33 = vpop.f32.mrf.mxu1 }
 0x119   : > { %v885_v31 = vadd.f32 %v854_v4, %v634_v2  ;;  %v1056_v53 = vadd.f32 %v4072_v37, %v886_v1 }
 0x11a   : > { %v4049_v57 = vpop.f32.mrf.mxu0  ;;  %v1034_v41 = vpop.f32.mrf.mxu1 }
 0x11b   : > { %v888_v47 = vadd.f32 %v4049_v57, %v649_v14  ;;  %v1055_v7 = vadd.f32 %v1024_v5, %v885_v31 }
 0x11c   : > { %v864_v11 = vpop.f32.mrf.mxu0  ;;  %v5102_v49 = vpop.f32.mrf.mxu1 }
 0x11d   : > { %v887_v3 = vadd.f32 %v864_v11, %v644_v21  ;;  %v1058_v16 = vadd.f32 %v4075_v33, %v888_v47 }
 0x11e   : > { %v5104_v54 = vpop.f32.mrf.mxu0  ;;  %v5106_v29 = vpop.f32.mrf.mxu1 }
 0x11f   : > { %v1057_v40 = vadd.f32 %v1034_v41, %v887_v3 }
 0x120   : > { %v5108_v56 = vpop.f32.mrf.mxu0  ;;  %v5110_v28 = vpop.f32.mrf.mxu1 }
 0x122   : > { %v5112_v2 = vpop.f32.mrf.mxu0  ;;  %v5114_v6 = vpop.f32.mrf.mxu1 }
 0x124   : > { %v5116_v14 = vpop.f32.mrf.mxu0  ;;  %v5118_v19 = vpop.f32.mrf.mxu1 }
 0x126   : > { %v4086_v13 = vpop.f32.mrf.mxu0  ;;  %v5120_v21 = vpop.f32.mrf.mxu1 }
 0x127   : > { %v5122_v45 = vadd.f32 %v4086_v13, %v1048_v27 }
 0x128   : > { %v1158_v17 = vpop.f32.mrf.mxu0  ;;  %v5124_v18 = vpop.f32.mrf.mxu1 }
 0x129   : > { %v5126_v26 = vadd.f32 %v1158_v17, %v1047_v36 }
 0x12a   : > { %v4089_v30 = vpop.f32.mrf.mxu0  ;;  %v5128_v34 = vpop.f32.mrf.mxu1 }
 0x12b   : > { %v5130_v35 = vadd.f32 %v4089_v30, %v1050_v42 }
 0x12c   : > { %v1168_v38 = vpop.f32.mrf.mxu0  ;;  %v4118_v43 = vpop.f32.mrf.mxu1 }
 0x12d   : > { %v5132_v44 = vadd.f32 %v1168_v38, %v1049_v46 }
 0x12e   : > { %v4092_v50 = vpop.f32.mrf.mxu0  ;;  %v1351_v51 = vpop.f32.mrf.mxu1 }
 0x12f   : > { %v1226_v55 = vadd.f32 %v4092_v50, %v1052_v52 }
 0x130   : > { %v1178_v58 = vpop.f32.mrf.mxu0  ;;  %v4121_v27 = vpop.f32.mrf.mxu1 }
 0x131   : > { %v1225_v60 = vadd.f32 %v1178_v58, %v1051_v10  ;;  %v1399_v61 = vadd.f32 %v4118_v43, %v1226_v55 }
 0x132   : > { %v4095_v63 = vpop.f32.mrf.mxu0  ;;  %v1361_v0 = vpop.f32.mrf.mxu1 }
 0x133   : > { %v1228_v36 = vadd.f32 %v4095_v63, %v1054_v39  ;;  %v1398_v59 = vadd.f32 %v1351_v51, %v1225_v60 }
 0x134   : > { %v1188_v20 = vpop.f32.mrf.mxu0  ;;  %v4124_v37 = vpop.f32.mrf.mxu1 }
 0x135   : > { %v1227_v62 = vadd.f32 %v1188_v20, %v1053_v8  ;;  %v1401_v42 = vadd.f32 %v4121_v27, %v1228_v36  ;;  %v1043_v27 = vadd.f32 %v5088_v22, %v5094_v32 }
 0x136   : > { %v4098_v48 = vpop.f32.mrf.mxu0  ;;  %v1371_v5 = vpop.f32.mrf.mxu1 }
 0x137   : > { %v1230_v1 = vadd.f32 %v4098_v48, %v1056_v53  ;;  %v1400_v46 = vadd.f32 %v1361_v0, %v1227_v62  ;;  %v1217_v36 = vadd.f32 %v5108_v56, %v1043_v27 }
 0x138   : > { %v1198_v4 = vpop.f32.mrf.mxu0  ;;  %v4127_v33 = vpop.f32.mrf.mxu1 }
 0x139   : > { %v1229_v31 = vadd.f32 %v1198_v4, %v1055_v7  ;;  %v1403_v52 = vadd.f32 %v4124_v37, %v1230_v1  ;;  %v1390_v32 = vadd.f32 %v5106_v29, %v1217_v36 }
 0x13a   : > { %v4101_v57 = vpop.f32.mrf.mxu0  ;;  %v1381_v11 = vpop.f32.mrf.mxu1 }
 0x13b   : > { %v1232_v41 = vadd.f32 %v4101_v57, %v1058_v16  ;;  %v1402_v10 = vadd.f32 %v1371_v5, %v1229_v31 }
 0x13c   : > { %v1208_v47 = vpop.f32.mrf.mxu0  ;;  %v4158_v63 = vpop.f32.mrf.mxu1 }
 0x13d   : > { %v1231_v3 = vadd.f32 %v1208_v47, %v1057_v40  ;;  %v1405_v39 = vadd.f32 %v4127_v33, %v1232_v41 }
 0x13e   : > { %v4132_v13 = vpop.f32.mrf.mxu0  ;;  %v1655_v48 = vpop.f32.mrf.mxu1 }
 0x13f   : > { %v1404_v17 = vadd.f32 %v1381_v11, %v1231_v3 }
 0x140   : > { %v1481_v30 = vpop.f32.mrf.mxu0 }
 0x142   : > { %v4135_v8 = vpop.f32.mrf.mxu0 }
 0x144   : > { %v1491_v38 = vpop.f32.mrf.mxu0 }
 0x146   : > { %v5134_v43 = vpop.f32.mrf.mxu0 }
 0x148   : > { %v1501_v53 = vpop.f32.mrf.mxu0 }
 0x14a   : > { %v5136_v50 = vpop.f32.mrf.mxu0 }
 0x14c   : > { %v5138_v51 = vpop.f32.mrf.mxu0 }
 0x14e   : > { %v4144_v7 = vpop.f32.mrf.mxu0 }
 0x14f   : > { %v5140_v55 = vadd.f32 %v4144_v7, %v1399_v61  ;;  %v1044_v61 = vadd.f32 %v5086_v12, %v5090_v25  ;;  %v1560_v12 = vadd.f32 %v1481_v30, %v1390_v32 }
 0x150   : > { %v1521_v16 = vpop.f32.mrf.mxu0 }
 0x151   : > { %v5142_v58 = vadd.f32 %v1521_v16, %v1398_v59  ;;  %v1045_v59 = vadd.f32 %v5096_v15, %v5100_v9  ;;  %v1218_v22 = vadd.f32 %v5104_v54, %v1044_v61  ;;  %v4161_v15 = vpop.f32.mrf.mxu1 }
 0x152   : > { %v4147_v40 = vpop.f32.mrf.mxu0 }
 0x153   : > { %v5146_v60 = vadd.f32 %v4147_v40, %v1401_v42  ;;  %v1219_v42 = vadd.f32 %v5116_v14, %v1045_v59  ;;  %v1391_v4 = vadd.f32 %v5102_v49, %v1218_v22  ;;  %v1665_v41 = vpop.f32.mrf.mxu1 }
 0x154   : > { %v1531_v0 = vpop.f32.mrf.mxu0 }
 0x155   : > { %v5149_v20 = vadd.f32 %v1531_v0, %v1400_v46  ;;  %v1046_v46 = vadd.f32 %v5092_v23, %v5098_v24  ;;  %v1392_v54 = vadd.f32 %v5114_v6, %v1219_v42  ;;  %v1561_v31 = vadd.f32 %v4132_v13, %v1391_v4  ;;  %v4164_v13 = vpop.f32.mrf.mxu1 }
 0x156   : > { %v4150_v37 = vpop.f32.mrf.mxu0 }
 0x157   : > { %v5155_v62 = vadd.f32 %v4150_v37, %v1403_v52  ;;  %v1220_v33 = vadd.f32 %v5112_v2, %v1046_v46  ;;  %v1734_v52 = vadd.f32 %v1655_v48, %v1560_v12  ;;  %v1562_v57 = vadd.f32 %v1491_v38, %v1392_v54  ;;  %v1675_v7 = vpop.f32.mrf.mxu1 }
 0x158   : > { %v1541_v5 = vpop.f32.mrf.mxu0  ;;  %v1735_v11 = vadd.f32 %v4158_v63, %v1561_v31  ;;  %v1396_v63 = vadd.f32 %v5128_v34, %v5132_v44  ;;  %v1397_v48 = vadd.f32 %v5124_v18, %v5130_v35 }
 0x159   : > { %v5160_v56 = vadd.f32 %v1541_v5, %v1402_v10  ;;  %v1393_v23 = vadd.f32 %v5110_v28, %v1220_v33  ;;  %v1394_v28 = vadd.f32 %v5120_v21, %v5126_v26  ;;  %v4167_v27 = vpop.f32.mrf.mxu1 }
 0x15a   : > { %v4153_v1 = vpop.f32.mrf.mxu0  ;;  %v1566_v61 = vadd.f32 %v5138_v51, %v1396_v63  ;;  %v1567_v5 = vadd.f32 %v5136_v50, %v1397_v48  ;;  %v5249_v48 = vld [vmem:[%s5817_s2 + $0x20] sm:$0xff] }
 0x15b   : > { %v5164_v25 = vadd.f32 %v4153_v1, %v1405_v39  ;;  %v1563_v3 = vadd.f32 %v4135_v8, %v1393_v23  ;;  %v1736_v39 = vadd.f32 %v1665_v41, %v1562_v57  ;;  %v1564_v40 = vadd.f32 %v1501_v53, %v1394_v28  ;;  %v1685_v59 = vpop.f32.mrf.mxu1 }
 0x15c   : > { %v1551_v9 = vpop.f32.mrf.mxu0  ;;  %v1395_v8 = vadd.f32 %v5118_v19, %v5122_v45  ;;  %v1740_v22 = vadd.f32 %v1685_v59, %v1566_v61  ;;  %v1741_v34 = vadd.f32 %v4167_v27, %v1567_v5  ;;  %v5214_v27 = vld [vmem:[%s5817_s2 + $0x38] sm:$0xff] }
 0x15d   : > { %v5169_v29 = vadd.f32 %v1551_v9, %v1404_v17  ;;  %v1737_v6 = vadd.f32 %v4161_v15, %v1563_v3  ;;  %v1738_v37 = vadd.f32 %v1675_v7, %v1564_v40  ;;  %4206 = vmatprep.subr.mxu1 %v5214_v27  ;;  %4250 = vmatprep.subr.mxu0 %v5214_v27 }
 0x15e   : > { %v4184_v14 = vpop.f32.mrf.mxu0  ;;  %v1565_v36 = vadd.f32 %v5134_v43, %v1395_v8  ;;  %v4170_v43 = vpop.f32.mrf.mxu1  ;;  %4207 = vmatpush3.msra.mxu1 %v5214_v27  ;;  %4251 = vmatpush3.msra.mxu0 %v5214_v27 }
 0x15f   : > { %v1908_v2 = vadd.f32 %v4184_v14, %v1735_v11  ;;  %v1743_v15 = vadd.f32 %v4170_v43, %v5140_v55 }
 0x160   : > { %v1828_v10 = vpop.f32.mrf.mxu0  ;;  %v1739_v53 = vadd.f32 %v4164_v13, %v1565_v36  ;;  %v1695_v32 = vpop.f32.mrf.mxu1  ;;  %v5227_v36 = vld [vmem:[%s5817_s2 + $0x30] sm:$0xff] }
 0x161   : > { %v1907_v24 = vadd.f32 %v1828_v10, %v1734_v52  ;;  %v1742_v35 = vadd.f32 %v1695_v32, %v5142_v58  ;;  %4208 = vmatprep.subr.mxu1 %v5227_v36  ;;  %4252 = vmatprep.subr.mxu0 %v5227_v36 }
 0x162   : > { %v4187_v47 = vpop.f32.mrf.mxu0  ;;  %v4173_v1 = vpop.f32.mrf.mxu1  ;;  %4209 = vmatpush3.msra.mxu1 %v5227_v36  ;;  %4253 = vmatpush3.msra.mxu0 %v5227_v36 }
 0x163   : > { %1923 = vxpose.xlu1.b32.start [1/2] (short) (narrow) %v1907_v24, 64  ;;  %v1910_v17 = vadd.f32 %v4187_v47, %v1737_v6  ;;  %v1745_v54 = vadd.f32 %v4173_v1, %v5146_v60 }
 0x164   : > { %v1838_v49 = vpop.f32.mrf.mxu0  ;;  %v1705_v46 = vpop.f32.mrf.mxu1 }
 0x165   : > { %v1909_v30 = vadd.f32 %v1838_v49, %v1736_v39  ;;  %v1744_v9 = vadd.f32 %v1705_v46, %v5149_v20 }
 0x166   : > { %v4190_v38 = vpop.f32.mrf.mxu0  ;;  %v4176_v31 = vpop.f32.mrf.mxu1 }
 0x167   : > { %1924 = vxpose.xlu1.b32.end [2/2] (short) (narrow) %v1908_v2, 64  ;;  %1955 = vxpose.xlu0.b32.start [1/2] (short) (narrow) %v1909_v30, 64  ;;  %v1912_v19 = vadd.f32 %v4190_v38, %v1739_v53  ;;  %v1747_v47 = vadd.f32 %v4176_v31, %v5155_v62 }
 0x168   : > { %v1848_v16 = vpop.f32.mrf.mxu0  ;;  %v1715_v57 = vpop.f32.mrf.mxu1 }
 0x169   : > { %v1911_v21 = vadd.f32 %v1848_v16, %v1738_v37  ;;  %v1746_v23 = vadd.f32 %v1715_v57, %v5160_v56  ;;  %v5236_v37 = vld [vmem:[%s5817_s2 + $0x28] sm:$0xff] }
 0x16a   : > { %v4193_v0 = vpop.f32.mrf.mxu0  ;;  %v4179_v41 = vpop.f32.mrf.mxu1  ;;  %4210 = vmatprep.subr.mxu1 %v5236_v37  ;;  %4254 = vmatprep.subr.mxu0 %v5236_v37 }
 0x16b   : > { %1956 = vxpose.xlu0.b32.end [2/2] (short) (narrow) %v1910_v17, 64  ;;  %v1914_v44 = vadd.f32 %v4193_v0, %v1741_v34  ;;  %v1749_v39 = vadd.f32 %v4179_v41, %v5164_v25  ;;  %4211 = vmatpush3.msra.mxu1 %v5236_v37 }
 0x16c   : > { %v1858_v26 = vpop.f32.mrf.mxu0  ;;  %v1725_v55 = vpop.f32.mrf.mxu1  ;;  %4212 = vmatprep.subr.mxu1 %v5249_v48  ;;  %4255 = vmatpush3.msra.mxu0 %v5236_v37 }
 0x16d   : > { %v1913_v45 = vadd.f32 %v1858_v26, %v1740_v22  ;;  %v1748_v11 = vadd.f32 %v1725_v55, %v5169_v29  ;;  %4213 = vmatpush3.msra.mxu1 %v5249_v48  ;;  %4256 = vmatprep.subr.mxu0 %v5249_v48  ;;  %v5272_v22 = vld [vmem:[%s5817_s2 + $0x10] sm:$0xff] }
 0x16e   : > { %v4196_v51 = vpop.f32.mrf.mxu0  ;;  %4257 = vmatpush3.msra.mxu0 %v5249_v48 }
 0x16f   : > { %v1916_v4 = vadd.f32 %v4196_v51, %v1743_v15  ;;  %v5296_v51 = vld [vmem:[%s5817_s2] sm:$0xff] }
 0x170   : > { %v1868_v42 = vpop.f32.mrf.mxu0 }
 0x171   : > { %v1915_v12 = vadd.f32 %v1868_v42, %v1742_v35 }
 0x172   : > { %v4199_v18 = vpop.f32.mrf.mxu0 }
 0x173   : > { %v1918_v14 = vadd.f32 %v4199_v18, %v1745_v54 }
 0x174   : > { %v1878_v50 = vpop.f32.mrf.mxu0 }
 0x175   : > { %v1917_v33 = vadd.f32 %v1878_v50, %v1744_v9 }
 0x176   : > { %v4202_v52 = vpop.f32.mrf.mxu0 }
 0x177   : > { %v1920_v60 = vadd.f32 %v4202_v52, %v1747_v47 }
 0x178   : > { %v1888_v58 = vpop.f32.mrf.mxu0 }
 0x179   : > { %v1919_v24 = vadd.f32 %v1888_v58, %v1746_v23 }
 0x17a   : > { %v4205_v10 = vpop.f32.mrf.mxu0 }
 0x17b   : > { %v1922_v49 = vadd.f32 %v4205_v10, %v1749_v39 }
 0x17c   : > { %v1898_v20 = vpop.f32.mrf.mxu0 }
 0x17d   : > { %v1921_v3 = vadd.f32 %v1898_v20, %v1748_v11 }
 0x180   : > { %1987 = vxpose.xlu1.b32.start [1/2] (short) (narrow) %v1911_v21, 64  ;;  %v5258_v21 = vld [vmem:[%s5817_s2 + $0x18] sm:$0xff] }
 0x181   : > { %4214 = vmatprep.subr.mxu1 %v5258_v21  ;;  %4258 = vmatprep.subr.mxu0 %v5258_v21 }
 0x182   : > { %4215 = vmatpush3.msra.mxu1 %v5258_v21  ;;  %4259 = vmatpush3.msra.mxu0 %v5258_v21 }
 0x183   : > { %4216 = vmatprep.subr.mxu1 %v5272_v22  ;;  %4260 = vmatprep.subr.mxu0 %v5272_v22 }
 0x184   : > { %1988 = vxpose.xlu1.b32.end [2/2] (short) (narrow) %v1912_v19, 64  ;;  %2019 = vxpose.xlu0.b32.start [1/2] (short) (narrow) %v1913_v45, 64  ;;  %v5282_v45 = vld [vmem:[%s5817_s2 + $0x8] sm:$0xff] }
 0x185   : > { %4217 = vmatpush3.msra.mxu1 %v5272_v22  ;;  %4261 = vmatpush3.msra.mxu0 %v5272_v22 }
 0x186   : > { %4218 = vmatprep.subr.mxu1 %v5282_v45  ;;  %4262 = vmatprep.subr.mxu0 %v5282_v45 }
 0x187   : > { %4219 = vmatpush3.msra.mxu1 %v5282_v45  ;;  %4263 = vmatpush3.msra.mxu0 %v5282_v45 }
 0x188   : > { %2020 = vxpose.xlu0.b32.end [2/2] (short) (narrow) %v1914_v44, 64  ;;  %4220 = vmatprep.subr.mxu1 %v5296_v51 }
 0x189   : > { %4221 = vmatpush3.msra.mxu1 %v5296_v51  ;;  %4264 = vmatprep.subr.mxu0 %v5296_v51 }
 0x18a   : > { %4228 = vmatprep.subr.mxu1 %v5214_v27  ;;  %4265 = vmatpush3.msra.mxu0 %v5296_v51 }
 0x19d   : > { %2051 = vxpose.xlu1.b32.start [1/2] (short) (narrow) %v1915_v12, 64 }
 0x1a1   : > { %2052 = vxpose.xlu1.b32.end [2/2] (short) (narrow) %v1916_v4, 64  ;;  %2083 = vxpose.xlu0.b32.start [1/2] (short) (narrow) %v1917_v33, 64 }
 0x1a5   : > { %2084 = vxpose.xlu0.b32.end [2/2] (short) (narrow) %v1918_v14, 64 }
 0x1ba   : > { %2115 = vxpose.xlu1.b32.start [1/2] (short) (narrow) %v1919_v24, 64 }
 0x1be   : > { %2116 = vxpose.xlu1.b32.end [2/2] (short) (narrow) %v1920_v60, 64  ;;  %2147 = vxpose.xlu0.b32.start [1/2] (short) (narrow) %v1921_v3, 64 }
 0x1c2   : > { %2148 = vxpose.xlu0.b32.end [2/2] (short) (narrow) %v1922_v49, 64 }
 0x1df   : > { %v5191_v2 = vpop.trf.xlu1 }
 0x1e0   : > { %v2196_v26 = vrot.slane %v5191_v2, 4 }
 0x1e3   : > { %v5193_v30 = vpop.trf.xlu0  ;;  %v1940_v56 = vpop.trf.xlu1 }
 0x1e4   : > { %v2228_v13 = vrot.slane %v1940_v56, 4  ;;  %v2207_v34 = vsel %vm325_vm0, %v2196_v26, %v5193_v30 }
 0x1e7   : > { %v1972_v6 = vpop.trf.xlu0  ;;  %v5195_v17 = vpop.trf.xlu1 }
 0x1e8   : > { %v2212_v7 = vrot.slane %v1972_v6, 4  ;;  %v2239_v16 = vsel %vm325_vm0, %v2228_v13, %v1972_v6  ;;  %v2421_v32 = vrot.slane %v5195_v17, 4 }
 0x1ea   : > { %v2223_v63 = vsel %vm325_vm0, %v1940_v56, %v2212_v7 }
 0x1eb   : > { %v5197_v62 = vpop.trf.xlu0  ;;  %v5199_v29 = vpop.trf.xlu1 }
 0x1ec   : > { %v2453_v46 = vrot.slane %v5199_v29, 4  ;;  %v2432_v50 = vsel %vm325_vm0, %v2421_v32, %v5197_v62 }
 0x1ef   : > { %v5201_v38 = vpop.trf.xlu0  ;;  %v5203_v25 = vpop.trf.xlu1 }
 0x1f0   : > { %v2464_v14 = vsel %vm325_vm0, %v2453_v46, %v5201_v38  ;;  %v2437_v52 = vrot.slane %v5201_v38, 4 }
 0x1f2   : > { %v2448_v47 = vsel %vm325_vm0, %v5199_v29, %v2437_v52 }
 0x1f3   : > { %v5205_v28 = vpop.trf.xlu0  ;;  %v5208_v40 = vpop.trf.xlu1 }
 0x1f4   : > { %2279 = vrot.lane.b32.xlu1 %v2239_v16, %s4413_s29 }
 0x1f7   : > { %v5218_v8 = vpop.trf.xlu0  ;;  %v5221_v0 = vpop.trf.xlu1 }
 0x1f8   : > { %2263 = vrot.lane.b32.xlu1 %v2223_v63, %s4414_s7 }
 0x1fb   : > { %v5241_v61 = vpop.trf.xlu0  ;;  %v5243_v59 = vpop.trf.xlu1 }
 0x1ff   : > { %v5264_v53 = vpop.trf.xlu0  ;;  %v5266_v5 = vpop.trf.xlu1 }
 0x200   : > { %v2199_v19 = vrot.slane %v5266_v5, 4 }
 0x203   : > { %v5289_v44 = vpop.trf.xlu0  ;;  %2247 = vrot.lane.b32.xlu0 %v2207_v34, %s4415_s30  ;;  %v2004_v43 = vpop.trf.xlu1 }
 0x204   : > { %v2231_v42 = vrot.slane %v2004_v43, 4  ;;  %v2208_v1 = vsel %vm325_vm0, %v2199_v19, %v5289_v44 }
 0x205   : > { %2249 = vrot.lane.b32.xlu1 %v2208_v1, %s4415_s30 }
 0x207   : > { %v2036_v18 = vpop.trf.xlu0  ;;  %v5307_v35 = vpop.trf.xlu1 }
 0x208   : > { %v2424_v12 = vrot.slane %v5307_v35, 4  ;;  %v2240_v15 = vsel %vm325_vm0, %v2231_v42, %v2036_v18  ;;  %v2215_v33 = vrot.slane %v2036_v18, 4 }
 0x209   : > { %2472 = vrot.lane.b32.xlu1 %v2432_v50, %s4415_s30  ;;  %2281 = vrot.lane.b32.xlu0 %v2240_v15, %s4413_s29 }
 0x20a   : > { %v2224_v23 = vsel %vm325_vm0, %v2004_v43, %v2215_v33 }
 0x20b   : > { %v5318_v9 = vpop.trf.xlu0  ;;  %v2006_v4 = vpop.trf.xlu1 }
 0x20c   : > { %v2456_v54 = vrot.slane %v2006_v4, 4  ;;  %v2433_v31 = vsel %vm325_vm0, %v2424_v12, %v5318_v9 }
 0x20d   : > { %2504 = vrot.lane.b32.xlu1 %v2464_v14, %s4413_s29  ;;  %2474 = vrot.lane.b32.xlu0 %v2433_v31, %s4415_s30 }
 0x20f   : > { %v2038_v57 = vpop.trf.xlu0  ;;  %v2007_v58 = vpop.trf.xlu1 }
 0x210   : > { %v2440_v41 = vrot.slane %v2038_v57, 4  ;;  %v2645_v10 = vrot.slane %v2007_v58, 4  ;;  %v2465_v55 = vsel %vm325_vm0, %v2456_v54, %v2038_v57 }
 0x211   : > { %2265 = vrot.lane.b32.xlu1 %v2224_v23, %s4414_s7  ;;  %2506 = vrot.lane.b32.xlu0 %v2465_v55, %s4413_s29 }
 0x212   : > { %v2449_v39 = vsel %vm325_vm0, %v2006_v4, %v2440_v41 }
 0x213   : > { %v2039_v24 = vpop.trf.xlu0  ;;  %v2008_v20 = vpop.trf.xlu1 }
 0x214   : > { %v2629_v11 = vrot.slane %v2039_v24, 4  ;;  %v5334_v60 = vsel %vm325_vm0, %v2645_v10, %v2039_v24  ;;  %v2677_v3 = vrot.slane %v2008_v20, 4  ;;  %v2863_v24 = vrot.slane %v5221_v0, 4 }
 0x215   : > { %2488 = vrot.lane.b32.xlu1 %v2448_v47, %s4414_s7  ;;  %2490 = vrot.lane.b32.xlu0 %v2449_v39, %s4414_s7 }
 0x216   : > { %v5340_v49 = vsel %vm325_vm0, %v2007_v58, %v2629_v11 }
 0x217   : > { %v2040_v56 = vpop.trf.xlu0  ;;  %v5342_v6 = vpop.trf.xlu1 }
 0x218   : > { %v2661_v13 = vrot.slane %v2040_v56, 4  ;;  %v5345_v29 = vsel %vm325_vm0, %v2677_v3, %v2040_v56  ;;  %v2874_v56 = vsel %vm325_vm0, %v2863_v24, %v5241_v61 }
 0x21a   : > { %v5348_v38 = vsel %vm325_vm0, %v2008_v20, %v2661_v13 }
 0x21b   : > { %v5350_v7 = vpop.trf.xlu0  ;;  %v5352_v16 = vpop.trf.xlu1 }
 0x21c   : > { %v2850_v63 = vrot.slane %v5350_v7, 4 }
 0x21e   : > { %v5357_v26 = vsel %vm325_vm0, %v5342_v6, %v2850_v63 }
 0x21f   : > { %v5359_v19 = vpop.trf.xlu0  ;;  %v2067_v34 = vpop.trf.xlu1 }
 0x220   : > { %v2882_v43 = vrot.slane %v5359_v19, 4  ;;  %v2202_v32 = vrot.slane %v2067_v34, 4 }
 0x222   : > { %v5364_v42 = vsel %vm325_vm0, %v5352_v16, %v2882_v43  ;;  %v2895_v43 = vrot.slane %v5243_v59, 4 }
 0x223   : > { %v2099_v1 = vpop.trf.xlu0  ;;  %v2068_v18 = vpop.trf.xlu1 }
 0x224   : > { %v2186_v46 = vrot.slane %v2099_v1, 4  ;;  %v2234_v12 = vrot.slane %v2068_v18, 4  ;;  %v2209_v50 = vsel %vm325_vm0, %v2202_v32, %v2099_v1 }
 0x225   : > { %2251 = vrot.lane.b32.xlu1 %v2209_v50, %s4415_s30  ;;  %v2906_v50 = vsel %vm325_vm0, %v2895_v43, %v5264_v53 }
 0x226   : > { %v5369_v15 = vsel %vm325_vm0, %v2067_v34, %v2186_v46 }
 0x227   : > { %v2100_v4 = vpop.trf.xlu0  ;;  %v2069_v33 = vpop.trf.xlu1 }
 0x228   : > { %v2218_v54 = vrot.slane %v2100_v4, 4  ;;  %v2241_v14 = vsel %vm325_vm0, %v2234_v12, %v2100_v4  ;;  %v2427_v57 = vrot.slane %v2069_v33, 4 }
 0x229   : > { %2283 = vrot.lane.b32.xlu1 %v2241_v14, %s4413_s29 }
 0x22a   : > { %v2225_v41 = vsel %vm325_vm0, %v2068_v18, %v2218_v54 }
 0x22b   : > { %v2101_v31 = vpop.trf.xlu0  ;;  %v2070_v52 = vpop.trf.xlu1 }
 0x22c   : > { %v2411_v58 = vrot.slane %v2101_v31, 4  ;;  %v2434_v20 = vsel %vm325_vm0, %v2427_v57, %v2101_v31  ;;  %v2459_v3 = vrot.slane %v2070_v52, 4 }
 0x22d   : > { %2267 = vrot.lane.b32.xlu1 %v2225_v41, %s4414_s7 }
 0x22e   : > { %v5376_v10 = vsel %vm325_vm0, %v2069_v33, %v2411_v58  ;;  %v2879_v33 = vrot.slane %v5264_v53, 4 }
 0x22f   : > { %v2102_v23 = vpop.trf.xlu0  ;;  %v5378_v55 = vpop.trf.xlu1 }
 0x230   : > { %v2466_v32 = vsel %vm325_vm0, %v2459_v3, %v2102_v23  ;;  %v2443_v46 = vrot.slane %v2102_v23, 4  ;;  %v2890_v41 = vsel %vm325_vm0, %v5243_v59, %v2879_v33 }
 0x231   : > { %2476 = vrot.lane.b32.xlu1 %v2434_v20, %s4415_s30 }
 0x232   : > { %v2450_v31 = vsel %vm325_vm0, %v2070_v52, %v2443_v46 }
 0x233   : > { %v5383_v47 = vpop.trf.xlu0  ;;  %v5385_v11 = vpop.trf.xlu1 }
 0x234   : > { %v2632_v39 = vrot.slane %v5383_v47, 4 }
 0x235   : > { %2914 = vrot.lane.b32.xlu1 %v2874_v56, %s4415_s30 }
 0x236   : > { %v5393_v13 = vsel %vm325_vm0, %v5378_v55, %v2632_v39 }
 0x237   : > { %v5395_v63 = vpop.trf.xlu0  ;;  %v2073_v34 = vpop.trf.xlu1 }
 0x238   : > { %v2869_v24 = vrot.slane %v2073_v34, 4 }
 0x239   : > { %2508 = vrot.lane.b32.xlu1 %v2466_v32, %s4413_s29 }
 0x23b   : > { %v2105_v1 = vpop.trf.xlu0  ;;  %v2074_v18 = vpop.trf.xlu1 }
 0x23c   : > { %v2853_v12 = vrot.slane %v2105_v1, 4  ;;  %v2876_v46 = vsel %vm325_vm0, %v2869_v24, %v2105_v1  ;;  %v2901_v33 = vrot.slane %v2074_v18, 4  ;;  %v2642_v24 = vrot.slane %v5203_v25, 4 }
 0x23d   : > { %2946 = vrot.lane.b32.xlu1 %v2906_v50, %s4413_s29 }
 0x23e   : > { %v5404_v4 = vsel %vm325_vm0, %v2073_v34, %v2853_v12 }
 0x23f   : > { %v2106_v54 = vpop.trf.xlu0  ;;  %v2131_v14 = vpop.trf.xlu1 }
 0x240   : > { %v2205_v57 = vrot.slane %v2131_v14, 4  ;;  %v2885_v43 = vrot.slane %v2106_v54, 4 }
 0x241   : > { %2492 = vrot.lane.b32.xlu1 %v2450_v31, %s4414_s7 }
 0x243   : > { %v2163_v58 = vpop.trf.xlu0  ;;  %v2132_v23 = vpop.trf.xlu1 }
 0x244   : > { %v2189_v20 = vrot.slane %v2163_v58, 4  ;;  %v2237_v3 = vrot.slane %v2132_v23, 4  ;;  %v2210_v39 = vsel %vm325_vm0, %v2205_v57, %v2163_v58 }
 0x245   : > { %2930 = vrot.lane.b32.xlu1 %v2890_v41, %s4414_s7  ;;  %2253 = vrot.lane.b32.xlu0 %v2210_v39, %s4415_s30 }
 0x246   : > { %v5415_v53 = vsel %vm325_vm0, %v2131_v14, %v2189_v20  ;;  %v2892_v14 = vsel %vm325_vm0, %v2074_v18, %v2885_v43  ;;  %v2866_v20 = vrot.slane %v5342_v6, 4 }
 0x247   : > { %v2164_v52 = vpop.trf.xlu0  ;;  %v2133_v56 = vpop.trf.xlu1 }
 0x248   : > { %v2221_v32 = vrot.slane %v2164_v52, 4  ;;  %v2242_v59 = vsel %vm325_vm0, %v2237_v3, %v2164_v52  ;;  %v2430_v34 = vrot.slane %v2133_v56, 4  ;;  %v2908_v3 = vsel %vm325_vm0, %v2901_v33, %v2106_v54 }
 0x249   : > { %2918 = vrot.lane.b32.xlu1 %v2876_v46, %s4415_s30  ;;  %2285 = vrot.lane.b32.xlu0 %v2242_v59, %s4413_s29  ;;  %v2658_v52 = vrot.slane %v5218_v8, 4  ;;  %v2875_v43 = vsel %vm325_vm0, %v2866_v20, %v5350_v7  ;;  %v2674_v46 = vrot.slane %v5208_v40, 4  ;;  %v2898_v7 = vrot.slane %v5352_v16, 4 }
 0x24a   : > { %v2226_v57 = vsel %vm325_vm0, %v2132_v23, %v2221_v32 }
 0x24b   : > { %v2165_v12 = vpop.trf.xlu0  ;;  %v2134_v50 = vpop.trf.xlu1  ;;  %v2685_v33 = vsel %vm325_vm0, %v2674_v46, %v5218_v8  ;;  %v2664_v8 = vrot.slane %v5395_v63, 4 }
 0x24c   : > { %v2414_v31 = vrot.slane %v2165_v12, 4  ;;  %v2435_v58 = vsel %vm325_vm0, %v2430_v34, %v2165_v12  ;;  %v2462_v23 = vrot.slane %v2134_v50, 4  ;;  %v2669_v12 = vsel %vm325_vm0, %v5208_v40, %v2658_v52 }
 0x24d   : > { %2934 = vrot.lane.b32.xlu1 %v2892_v14, %s4414_s7  ;;  %2269 = vrot.lane.b32.xlu0 %v2226_v57, %s4414_s7  ;;  %v2648_v14 = vrot.slane %v5378_v55, 4 }
 0x24e   : > { %v5426_v1 = vsel %vm325_vm0, %v2133_v56, %v2414_v31  ;;  %v2653_v56 = vsel %vm325_vm0, %v2642_v24, %v5205_v28 }
 0x24f   : > { %v2166_v41 = vpop.trf.xlu0  ;;  %v5434_v18 = vpop.trf.xlu1  ;;  %v2655_v20 = vsel %vm325_vm0, %v2648_v14, %v5383_v47 }
 0x250   : > { %v2467_v54 = vsel %vm325_vm0, %v2462_v23, %v2166_v41  ;;  %v2446_v57 = vrot.slane %v2166_v41, 4  ;;  %v2680_v41 = vrot.slane %v5385_v11, 4  ;;  %v2671_v23 = vsel %vm325_vm0, %v5385_v11, %v2664_v8 }
 0x251   : > { %2950 = vrot.lane.b32.xlu1 %v2908_v3, %s4413_s29  ;;  %2478 = vrot.lane.b32.xlu0 %v2435_v58, %s4415_s30  ;;  %v2907_v58 = vsel %vm325_vm0, %v2898_v7, %v5359_v19 }
 0x252   : > { %v2451_v55 = vsel %vm325_vm0, %v2134_v50, %v2446_v57  ;;  %v2687_v50 = vsel %vm325_vm0, %v2680_v41, %v5395_v63 }
 0x253   : > { %v5436_v39 = vpop.trf.xlu0  ;;  %v5452_v59 = vpop.trf.xlu1 }
 0x254   : > { %v2635_v6 = vrot.slane %v5436_v39, 4 }
 0x255   : > { %2693 = vrot.lane.b32.xlu1 %v2653_v56, %s4415_s30  ;;  %2916 = vrot.lane.b32.xlu0 %v2875_v43, %s4415_s30 }
 0x256   : > { %v5449_v32 = vsel %vm325_vm0, %v5434_v18, %v2635_v6 }
 0x257   : > { %v5454_v34 = vpop.trf.xlu0  ;;  %v2137_v40 = vpop.trf.xlu1 }
 0x258   : > { %v2872_v3 = vrot.slane %v2137_v40, 4 }
 0x259   : > { %2709 = vrot.lane.b32.xlu1 %v2669_v12, %s4414_s7  ;;  %2510 = vrot.lane.b32.xlu0 %v2467_v54, %s4413_s29 }
 0x25b   : > { %v2169_v31 = vpop.trf.xlu0  ;;  %v2138_v52 = vpop.trf.xlu1 }
 0x25c   : > { %v2856_v24 = vrot.slane %v2169_v31, 4  ;;  %v2877_v56 = vsel %vm325_vm0, %v2872_v3, %v2169_v31  ;;  %v2904_v6 = vrot.slane %v2138_v52, 4 }
 0x25d   : > { %2725 = vrot.lane.b32.xlu1 %v2685_v33, %s4413_s29  ;;  %2948 = vrot.lane.b32.xlu0 %v2907_v58, %s4413_s29 }
 0x25e   : > { %v5469_v16 = vsel %vm325_vm0, %v2137_v40, %v2856_v24  ;;  %v2667_v24 = vrot.slane %v5454_v34, 4 }
 0x25f   : > { %v2170_v19 = vpop.trf.xlu0 }
 0x260   : > { %v2888_v47 = vrot.slane %v2170_v19, 4  ;;  %v2909_v54 = vsel %vm325_vm0, %v2904_v6, %v2170_v19 }
 0x261   : > { %2697 = vrot.lane.b32.xlu1 %v2655_v20, %s4415_s30  ;;  %2494 = vrot.lane.b32.xlu0 %v2451_v55, %s4414_s7 }
 0x262   : > { %v2893_v43 = vsel %vm325_vm0, %v2138_v52, %v2888_v47 }
 0x265   : > { %2713 = vrot.lane.b32.xlu1 %v2671_v23, %s4414_s7  ;;  %2932 = vrot.lane.b32.xlu0 %v5364_v42, %s4414_s7  ;;  %v2180_v42 = vrot.slane %v5193_v30, 4 }
 0x266   : > { %v2280_v11 = vpop.permute.xlu1 %2279 }
 0x267   : > { %v2191_v63 = vsel %vm325_vm0, %v5191_v2, %v2180_v42  ;;  %v2183_v2 = vrot.slane %v5289_v44, 4 }
 0x269   : > { %2729 = vrot.lane.b32.xlu1 %v2687_v50, %s4413_s29  ;;  %2920 = vrot.lane.b32.xlu0 %v2877_v56, %s4415_s30  ;;  %v2192_v40 = vsel %vm325_vm0, %v5266_v5, %v2183_v2 }
 0x26a   : > { %v2264_v46 = vpop.permute.xlu1 %2263 }
 0x26d   : > { %2936 = vrot.lane.b32.xlu0 %v2893_v43, %s4414_s7 }
 0x271   : > { %2952 = vrot.lane.b32.xlu0 %v2909_v54, %s4413_s29 }
 0x275   : > { %2695 = vrot.lane.b32.xlu0 %v5334_v60, %s4415_s30  ;;  %v2248_v7 = vpop.permute.xlu0 %2247  ;;  %v2651_v60 = vrot.slane %v5434_v18, 4 }
 0x276   : > { %v2292_v12 = vsel %vm2291_vm4, %v2191_v63, %v2248_v7 }
 0x277   : > { %v2297_v33 = vsel %vm2296_vm5, %v2292_v12, %v2264_v46  ;;  %v2250_v31 = vpop.permute.xlu1 %2249  ;;  %v2656_v58 = vsel %vm325_vm0, %v2651_v60, %v5436_v39  ;;  %v2672_v39 = vsel %vm325_vm0, %v5452_v59, %v2667_v24 }
 0x278   : > { %v2302_v30 = vsel %vm2301_vm6, %v2297_v33, %v2280_v11  ;;  %v2293_v18 = vsel %vm2291_vm4, %v2192_v40, %v2250_v31  ;;  %v2408_v31 = vrot.slane %v5318_v9, 4 }
 0x279   : > { %2711 = vrot.lane.b32.xlu0 %v5348_v38, %s4414_s7  ;;  %4222 = vmatprep.mubr.msk.f32.mxu1 %vm2306_vm7, %v2302_v30  ;;  %v2405_v38 = vrot.slane %v5197_v62, 4 }
 0x27a   : > { %v2417_v2 = vsel %vm325_vm0, %v5307_v35, %v2408_v31 }
 0x27b   : > { %v2473_v14 = vpop.permute.xlu1 %2472  ;;  %v2282_v8 = vpop.permute.xlu0 %2281  ;;  %v2416_v62 = vsel %vm325_vm0, %v5195_v17, %v2405_v38 }
 0x27c   : > { %v2516_v5 = vsel %vm2291_vm4, %v2416_v62, %v2473_v14 }
 0x27d   : > { %2727 = vrot.lane.b32.xlu0 %v5345_v29, %s4413_s29  ;;  %v2683_v29 = vrot.slane %v5452_v59, 4 }
 0x27f   : > { %v2505_v57 = vpop.permute.xlu1 %2504  ;;  %v2688_v41 = vsel %vm325_vm0, %v2683_v29, %v5454_v34  ;;  %v2475_v43 = vpop.permute.xlu0 %2474 }
 0x281   : > { %2699 = vrot.lane.b32.xlu0 %v2656_v58, %s4415_s30  ;;  %v2517_v58 = vsel %vm2291_vm4, %v2417_v2, %v2475_v43 }
 0x283   : > { %v2266_v20 = vpop.permute.xlu1 %2265  ;;  %v2507_v54 = vpop.permute.xlu0 %2506 }
 0x284   : > { %v2298_v44 = vsel %vm2296_vm5, %v2293_v18, %v2266_v20 }
 0x285   : > { %v2303_v55 = vsel %vm2301_vm6, %v2298_v44, %v2282_v8  ;;  %2715 = vrot.lane.b32.xlu0 %v2672_v39, %s4414_s7  ;;  %s3561_s7 = sshll.u32 %s171_s6, 6 }
 0x286   : > { %4223 = vmatmul.mubr.msk.f32.vlgmr.msra.gmra.mxu1 %vm2306_vm7, %v2303_v55  ;;  %v2847_v55 = vrot.slane %v5241_v61, 4  ;;  %s5656_s12 = scalar_lea.vmem [#allocation2], %s3561_s7 }
 0x287   : > { %v2489_v19 = vpop.permute.xlu1 %2488  ;;  %4229 = vmatpush3.msra.mxu1 %v5214_v27  ;;  %v2491_v46 = vpop.permute.xlu0 %2490 }
 0x288   : > { %v2520_v3 = vsel %vm2296_vm5, %v2516_v5, %v2489_v19  ;;  %4230 = vmatprep.subr.mxu1 %v5227_v36  ;;  %v2521_v38 = vsel %vm2296_vm5, %v2517_v58, %v2491_v46  ;;  %v2858_v61 = vsel %vm325_vm0, %v5221_v0, %v2847_v55 }
 0x289   : > { %2731 = vrot.lane.b32.xlu0 %v2688_v41, %s4413_s29  ;;  %4231 = vmatpush3.msra.mxu1 %v5227_v36  ;;  %v2524_v17 = vsel %vm2301_vm6, %v2520_v3, %v2505_v57  ;;  %v2525_v35 = vsel %vm2301_vm6, %v2521_v38, %v2507_v54  ;;  %s4416_s29 = smov 64  }
 0x28a   : > { %4232 = vmatprep.subr.mxu1 %v5236_v37 }
 0x28b   : > { %4233 = vmatpush3.msra.mxu1 %v5236_v37 }
 0x28c   : > { %4234 = vmatprep.subr.mxu1 %v5249_v48 }
 0x28d   : > { %4235 = vmatpush3.msra.mxu1 %v5249_v48 }
 0x28e   : > { %4236 = vmatprep.subr.mxu1 %v5258_v21 }
 0x28f   : > { %4237 = vmatpush3.msra.mxu1 %v5258_v21 }
 0x290   : > { %4238 = vmatprep.subr.mxu1 %v5272_v22 }
 0x291   : > { %4239 = vmatpush3.msra.mxu1 %v5272_v22 }
 0x292   : > { %4240 = vmatprep.subr.mxu1 %v5282_v45 }
 0x293   : > { %4241 = vmatpush3.msra.mxu1 %v5282_v45 }
 0x294   : > { %4242 = vmatprep.subr.mxu1 %v5296_v51 }
 0x295   : > { %4243 = vmatpush3.msra.mxu1 %v5296_v51 }
 0x296   : > { %4272 = vmatprep.subr.mxu1 %v5214_v27 }
 0x297   : > { %v2252_v59 = vpop.permute.xlu1 %2251 }
 0x298   : > { %v2294_v23 = vsel %vm2291_vm4, %v5369_v15, %v2252_v59 }
 0x29b   : > { %v2284_v34 = vpop.permute.xlu1 %2283 }
 0x29f   : > { %v2268_v47 = vpop.permute.xlu1 %2267 }
 0x2a0   : > { %v2299_v52 = vsel %vm2296_vm5, %v2294_v23, %v2268_v47 }
 0x2a1   : > { %v2304_v50 = vsel %vm2301_vm6, %v2299_v52, %v2284_v34 }
 0x2a2   : > { %4225 = vmatprep.mubr.msk.f32.mxu1 %vm2306_vm7, %v2304_v50 }
 0x2a3   : > { %v2477_v56 = vpop.permute.xlu1 %2476 }
 0x2a4   : > { %v2518_v40 = vsel %vm2291_vm4, %v5376_v10, %v2477_v56  ;;  %v2626_v10 = vrot.slane %v5205_v28, 4 }
 0x2a6   : > { %v2637_v62 = vsel %vm325_vm0, %v5203_v25, %v2626_v10 }
 0x2a7   : > { %v2915_v6 = vpop.permute.xlu1 %2914 }
 0x2a8   : > { %v2958_v25 = vsel %vm2291_vm4, %v2858_v61, %v2915_v6 }
 0x2ab   : > { %v2509_v11 = vpop.permute.xlu1 %2508 }
 0x2af   : > { %v5551_v42 = vpop.permute.xlu1 %2946 }
 0x2b3   : > { %v2493_v63 = vpop.permute.xlu1 %2492 }
 0x2b4   : > { %v2522_v9 = vsel %vm2296_vm5, %v2518_v40, %v2493_v63 }
 0x2b5   : > { %v2526_v20 = vsel %vm2301_vm6, %v2522_v9, %v2509_v11 }
 0x2b7   : > { %v2931_v7 = vpop.permute.xlu1 %2930  ;;  %v2254_v12 = vpop.permute.xlu0 %2253 }
 0x2b8   : > { %v2295_v30 = vsel %vm2291_vm4, %v5415_v53, %v2254_v12 }
 0x2bb   : > { %v2919_v33 = vpop.permute.xlu1 %2918  ;;  %v2286_v15 = vpop.permute.xlu0 %2285 }
 0x2bf   : > { %v2935_v14 = vpop.permute.xlu1 %2934  ;;  %v2270_v60 = vpop.permute.xlu0 %2269 }
 0x2c0   : > { %v2300_v57 = vsel %vm2296_vm5, %v2295_v30, %v2270_v60 }
 0x2c1   : > { %v2305_v24 = vsel %vm2301_vm6, %v2300_v57, %v2286_v15 }
 0x2c2   : > { %4226 = vmatmul.mubr.msk.f32.gmra.mxu1 %vm2306_vm7, %v2305_v24 }
 0x2c3   : > { %v2951_v53 = vpop.permute.xlu1 %2950  ;;  %4244 = vmatprep.mubr.msk.f32.mxu1 %vm2306_vm7, %v2524_v17  ;;  %v2479_v18 = vpop.permute.xlu0 %2478 }
 0x2c6   : > { %4245 = vmatmul.mubr.msk.f32.vlgmr.msra.gmra.mxu1 %vm2306_vm7, %v2525_v35 }
 0x2c7   : > { %v2694_v29 = vpop.permute.xlu1 %2693  ;;  %4247 = vmatprep.mubr.msk.f32.mxu1 %vm2306_vm7, %v2526_v20  ;;  %v2917_v8 = vpop.permute.xlu0 %2916  ;;  %4273 = vmatpush3.msra.mxu1 %v5214_v27  ;;  %v4417_v20 = vmov 1966171168  }
 0x2c8   : > { %4274 = vmatprep.subr.mxu1 %v5227_v36  ;;  %v2737_v27 = vsel %vm2291_vm4, %v2637_v62, %v2694_v29  ;;  %v2959_v3 = vsel %vm2291_vm4, %v5357_v26, %v2917_v8  ;;  %v3081_v29 = vunpack.c.l.s4 %v4417_v20  ;;  %v3083_v8 = vlaneseq }
 0x2c9   : > { %4275 = vmatpush3.msra.mxu1 %v5227_v36 }
 0x2ca   : > { %4276 = vmatprep.subr.mxu1 %v5236_v37  ;;  %vm5648_vm8 = vcmp.lt.s32.totalorder %v3083_v8, 256 }
 0x2cb   : > { %v2710_v44 = vpop.permute.xlu1 %2709  ;;  %v2511_v39 = vpop.permute.xlu0 %2510  ;;  %4277 = vmatpush3.msra.mxu1 %v5236_v37 }
 0x2cc   : > { %4278 = vmatprep.subr.mxu1 %v5249_v48  ;;  %v2741_v28 = vsel %vm2296_vm5, %v2737_v27, %v2710_v44  ;;  %v3082_v44 = vunpack.c.0.s8 %v3081_v29 }
 0x2cd   : > { %4279 = vmatpush3.msra.mxu1 %v5249_v48  ;;  %v2962_v48 = vsel %vm2296_vm5, %v2958_v25, %v2931_v7 }
 0x2ce   : > { %4280 = vmatprep.subr.mxu1 %v5258_v21 }
 0x2cf   : > { %v2726_v36 = vpop.permute.xlu1 %2725  ;;  %v2949_v5 = vpop.permute.xlu0 %2948  ;;  %4281 = vmatpush3.msra.mxu1 %v5258_v21  ;;  %v2519_v21 = vsel %vm2291_vm4, %v5426_v1, %v2479_v18 }
 0x2d0   : > { %v2745_v37 = vsel %vm2301_vm6, %v2741_v28, %v2726_v36  ;;  %4282 = vmatprep.subr.mxu1 %v5272_v22 }
 0x2d1   : > { %4266 = vmatprep.mubr.msk.f32.mxu0 %vm2306_vm7, %v2745_v37  ;;  %4283 = vmatpush3.msra.mxu1 %v5272_v22  ;;  %v2966_v22 = vsel %vm2301_vm6, %v2962_v48, %v5551_v42 }
 0x2d2   : > { %4284 = vmatprep.subr.mxu1 %v5282_v45 }
 0x2d3   : > { %v2495_v19 = vpop.permute.xlu0 %2494  ;;  %4285 = vmatpush3.msra.mxu1 %v5282_v45  ;;  %v2960_v45 = vsel %vm2291_vm4, %v5404_v4, %v2919_v33  ;;  %v2698_v47 = vpop.permute.xlu1 %2697 }
 0x2d4   : > { %v2523_v41 = vsel %vm2296_vm5, %v2519_v21, %v2495_v19  ;;  %4286 = vmatprep.subr.mxu1 %v5296_v51  ;;  %v2964_v59 = vsel %vm2296_vm5, %v2960_v45, %v2935_v14  ;;  %v2739_v46 = vsel %vm2291_vm4, %v5393_v13, %v2698_v47 }
 0x2d5   : > { %v2527_v0 = vsel %vm2301_vm6, %v2523_v41, %v2511_v39  ;;  %4287 = vmatpush3.msra.mxu1 %v5296_v51  ;;  %v2968_v34 = vsel %vm2301_vm6, %v2964_v59, %v2951_v53  ;;  %v3084_v39 = vshrl.u32 %v3083_v8, 7 }
 0x2d6   : > { %4248 = vmatmul.mubr.msk.f32.gmra.mxu1 %vm2306_vm7, %v2527_v0 }
 0x2d7   : > { %4288 = vmatprep.mubr.msk.f32.mxu1 %vm2306_vm7, %v2966_v22  ;;  %v2933_v1 = vpop.permute.xlu0 %2932  ;;  %v2714_v6 = vpop.permute.xlu1 %2713  ;;  %v5641_v62 = vsub.s32 %v3082_v44, %v3084_v39 }
 0x2d8   : > { %v2963_v17 = vsel %vm2296_vm5, %v2959_v3, %v2933_v1  ;;  %v2743_v7 = vsel %vm2296_vm5, %v2739_v46, %v2714_v6 }
 0x2d9   : > { %v2967_v51 = vsel %vm2301_vm6, %v2963_v17, %v2949_v5 }
 0x2da   : > { %4289 = vmatmul.mubr.msk.f32.vlgmr.msra.gmra.mxu1 %vm2306_vm7, %v2967_v51 }
 0x2db   : > { %4291 = vmatprep.mubr.msk.f32.mxu1 %vm2306_vm7, %v2968_v34  ;;  %v2921_v23 = vpop.permute.xlu0 %2920  ;;  %v2730_v54 = vpop.permute.xlu1 %2729 }
 0x2dc   : > { %v2961_v52 = vsel %vm2291_vm4, %v5469_v16, %v2921_v23  ;;  %v2747_v33 = vsel %vm2301_vm6, %v2743_v7, %v2730_v54 }
 0x2df   : > { %v2937_v26 = vpop.permute.xlu0 %2936 }
 0x2e0   : > { %v2965_v4 = vsel %vm2296_vm5, %v2961_v52, %v2937_v26 }
 0x2e3   : > { %v2953_v50 = vpop.permute.xlu0 %2952 }
 0x2e4   : > { %v2969_v56 = vsel %vm2301_vm6, %v2965_v4, %v2953_v50 }
 0x2e5   : > { %4292 = vmatmul.mubr.msk.f32.gmra.mxu1 %vm2306_vm7, %v2969_v56 }
 0x2e7   : > { %v2696_v43 = vpop.permute.xlu0 %2695 }
 0x2e8   : > { %v2738_v42 = vsel %vm2291_vm4, %v5340_v49, %v2696_v43 }
 0x2eb   : > { %v2712_v11 = vpop.permute.xlu0 %2711 }
 0x2ec   : > { %v2742_v63 = vsel %vm2296_vm5, %v2738_v42, %v2712_v11 }
 0x2ef   : > { %v2728_v16 = vpop.permute.xlu0 %2727 }
 0x2f0   : > { %v2746_v12 = vsel %vm2301_vm6, %v2742_v63, %v2728_v16 }
 0x2f1   : > { %4267 = vmatmul.mubr.msk.f32.vlgmr.msra.gmra.mxu0 %vm2306_vm7, %v2746_v12 }
 0x2f2   : > { %4269 = vmatprep.mubr.msk.f32.mxu0 %vm2306_vm7, %v2747_v33 }
 0x2f3   : > { %v2700_v15 = vpop.permute.xlu0 %2699 }
 0x2f4   : > { %v2740_v49 = vsel %vm2291_vm4, %v5449_v32, %v2700_v15 }
 0x2f7   : > { %v2716_v31 = vpop.permute.xlu0 %2715 }
 0x2f8   : > { %v2744_v13 = vsel %vm2296_vm5, %v2740_v49, %v2716_v31 }
 0x2fb   : > { %v2732_v30 = vpop.permute.xlu0 %2731 }
 0x2fc   : > { %v2748_v14 = vsel %vm2301_vm6, %v2744_v13, %v2732_v30 }
 0x2fd   : > { %4270 = vmatmul.mubr.msk.f32.gmra.mxu0 %vm2306_vm7, %v2748_v14 }
 0x346   : > { %v4224_v60 = vpop.f32.mrf.mxu1 }
 0x348   : > { %v2385_v2 = vpop.f32.mrf.mxu1 }
 0x382   : > { %v5636_v57 = vpop.f32.mrf.mxu1 }
 0x384   : > { %v5638_v58 = vpop.f32.mrf.mxu1 }
 0x386   : > { %v4246_v24 = vpop.f32.mrf.mxu1 }
 0x387   : > { %3165 = vrot.lane.b32.xlu1 %v4246_v24, %s4416_s29 }
 0x388   : > { %v2606_v38 = vpop.f32.mrf.mxu1 }
 0x38b   : > { %3068 = vrot.lane.b32.xlu1 %v2606_v38, %s4416_s29 }
 0x396   : > { %v4249_v40 = vpop.f32.mrf.mxu1 }
 0x398   : > { %v2616_v32 = vpop.f32.mrf.mxu1 }
 0x399   : > { %3259 = vrot.lane.b32.xlu1 %v2616_v32, %s4416_s29 }
 0x39a   : > { %v4290_v9 = vpop.f32.mrf.mxu1 }
 0x39b   : > { %3169 = vrot.lane.b32.xlu0 %v4290_v9, %s4416_s29 }
 0x39c   : > { %v3048_v53 = vpop.f32.mrf.mxu1 }
 0x39d   : > { %3353 = vrot.lane.b32.xlu1 %v4249_v40, %s4416_s29 }
 0x39f   : > { %3072 = vrot.lane.b32.xlu0 %v3048_v53, %s4416_s29 }
 0x3a5   : > { %v4293_v18 = vpop.f32.mrf.mxu1 }
 0x3a7   : > { %v3058_v35 = vpop.f32.mrf.mxu1 }
 0x3a8   : > { %3263 = vrot.lane.b32.xlu0 %v3058_v35, %s4416_s29 }
 0x3ac   : > { %3357 = vrot.lane.b32.xlu0 %v4293_v18, %s4416_s29 }
 0x3b1   : > { %v4268_v55 = vpop.f32.mrf.mxu0 }
 0x3b3   : > { %v2827_v25 = vpop.f32.mrf.mxu0 }
 0x3bd   : > { %v4271_v52 = vpop.f32.mrf.mxu0 }
 0x3bf   : > { %v2837_v63 = vpop.f32.mrf.mxu0 }
 0x3f9   : > { %v3166_v10 = vpop.permute.xlu1 %3165 }
 0x3fa   : > { %v3172_v28 = vsel %vm2306_vm7, %v4224_v60, %v3166_v10 }
 0x3fd   : > { %v3069_v5 = vpop.permute.xlu1 %3068 }
 0x3fe   : > { %v3075_v41 = vsel %vm2306_vm7, %v2385_v2, %v3069_v5 }
 0x40b   : > { %v3260_v4 = vpop.permute.xlu1 %3259 }
 0x40c   : > { %v3266_v31 = vsel %vm2306_vm7, %v5638_v58, %v3260_v4 }
 0x40d   : > { %v3170_v27 = vpop.permute.xlu0 %3169 }
 0x40e   : > { %v3173_v36 = vsel %vm2306_vm7, %v4268_v55, %v3170_v27 }
 0x40f   : > { %v3176_v37 = vcombine.low %v3172_v28, %v3173_v36  ;;  %v3217_v61 = vcombine.high %v3172_v28, %v3173_v36  ;;  %v3354_v13 = vpop.permute.xlu1 %3353 }
 0x410   : > { %v3360_v40 = vsel %vm2306_vm7, %v5636_v57, %v3354_v13 }
 0x411   : > { %v3183_v48 = vrot.slane %v3176_v37, %v5641_v62  ;;  %v3224_v21 = vrot.slane %v3217_v61, %v5641_v62  ;;  %v3073_v19 = vpop.permute.xlu0 %3072 }
 0x412   : > { %v3076_v22 = vsel %vm2306_vm7, %v2827_v25, %v3073_v19 }
 0x413   : > { %v3184_v3 = vcombine.high %v3183_v48, %v3183_v48  ;;  %v3191_v1 = vrot.slane %v3183_v48, %v5641_v62  ;;  %v3225_v45 = vcombine.high %v3224_v21, %v3224_v21  ;;  %v3232_v17 = vrot.slane %v3224_v21, %v5641_v62 }
 0x414   : > { %v3079_v59 = vcombine.low %v3075_v41, %v3076_v22  ;;  %v3123_v51 = vcombine.high %v3075_v41, %v3076_v22 }
 0x415   : > { %v3198_v34 = vrot.slane %v3184_v3, %v5641_v62  ;;  %v3199_v23 = vcombine.high %v3191_v1, %v3191_v1  ;;  %3741 = vst.msk [vmem:[%s5656_s12 + $0x2] ss:$8 sm:$0x3] %vm5648_vm8, %v3191_v1  ;;  %v3239_v26 = vrot.slane %v3225_v45, %v5641_v62  ;;  %v3240_v47 = vcombine.high %v3232_v17, %v3232_v17 }
 0x416   : > { %3745 = vst.msk [vmem:[%s5656_s12 + $0x3] ss:$8 sm:$0x3] %vm5648_vm8, %v3232_v17  ;;  %v3086_v50 = vrot.slane %v3079_v59, %v5641_v62  ;;  %v3130_v56 = vrot.slane %v3123_v51, %v5641_v62 }
 0x417   : > { %v3200_v43 = vcombine.high %v3198_v34, %v3198_v34  ;;  %3742 = vst.msk [vmem:[%s5656_s12 + $0x12] ss:$8 sm:$0x3] %vm5648_vm8, %v3198_v34  ;;  %3743 = vst.msk [vmem:[%s5656_s12 + $0x22] ss:$8 sm:$0x3] %vm5648_vm8, %v3199_v23  ;;  %v3241_v6 = vcombine.high %v3239_v26, %v3239_v26 }
 0x418   : > { %3746 = vst.msk [vmem:[%s5656_s12 + $0x13] ss:$8 sm:$0x3] %vm5648_vm8, %v3239_v26  ;;  %3747 = vst.msk [vmem:[%s5656_s12 + $0x23] ss:$8 sm:$0x3] %vm5648_vm8, %v3240_v47  ;;  %v3087_v11 = vcombine.high %v3086_v50, %v3086_v50  ;;  %v3094_v54 = vrot.slane %v3086_v50, %v5641_v62  ;;  %v3131_v42 = vcombine.high %v3130_v56, %v3130_v56 }
 0x419   : > { %v3138_v46 = vrot.slane %v3130_v56, %v5641_v62  ;;  %3744 = vst.msk [vmem:[%s5656_s12 + $0x32] ss:$8 sm:$0x3] %vm5648_vm8, %v3200_v43  ;;  %3748 = vst.msk [vmem:[%s5656_s12 + $0x33] ss:$8 sm:$0x3] %vm5648_vm8, %v3241_v6 }
 0x41a   : > { %v3101_v16 = vrot.slane %v3087_v11, %v5641_v62  ;;  %v3102_v7 = vcombine.high %v3094_v54, %v3094_v54  ;;  %3112 = vst.msk [vmem:[%s5656_s12] ss:$8 sm:$0x3] %vm5648_vm8, %v3094_v54  ;;  %v3145_v12 = vrot.slane %v3131_v42, %v5641_v62  ;;  %v3264_v15 = vpop.permute.xlu0 %3263 }
 0x41b   : > { %v3146_v33 = vcombine.high %v3138_v46, %v3138_v46  ;;  %3737 = vst.msk [vmem:[%s5656_s12 + $0x1] ss:$8 sm:$0x3] %vm5648_vm8, %v3138_v46  ;;  %v3267_v49 = vsel %vm2306_vm7, %v2837_v63, %v3264_v15 }
 0x41c   : > { %v3103_v30 = vcombine.high %v3101_v16, %v3101_v16  ;;  %3734 = vst.msk [vmem:[%s5656_s12 + $0x10] ss:$8 sm:$0x3] %vm5648_vm8, %v3101_v16  ;;  %3735 = vst.msk [vmem:[%s5656_s12 + $0x20] ss:$8 sm:$0x3] %vm5648_vm8, %v3102_v7  ;;  %v3147_v14 = vcombine.high %v3145_v12, %v3145_v12  ;;  %v3270_v60 = vcombine.low %v3266_v31, %v3267_v49 }
 0x41d   : > { %3738 = vst.msk [vmem:[%s5656_s12 + $0x11] ss:$8 sm:$0x3] %vm5648_vm8, %v3145_v12  ;;  %3739 = vst.msk [vmem:[%s5656_s12 + $0x21] ss:$8 sm:$0x3] %vm5648_vm8, %v3146_v33  ;;  %v3311_v2 = vcombine.high %v3266_v31, %v3267_v49 }
 0x41e   : > { %3736 = vst.msk [vmem:[%s5656_s12 + $0x30] ss:$8 sm:$0x3] %vm5648_vm8, %v3103_v30  ;;  %3740 = vst.msk [vmem:[%s5656_s12 + $0x31] ss:$8 sm:$0x3] %vm5648_vm8, %v3147_v14  ;;  %v3277_v58 = vrot.slane %v3270_v60, %v5641_v62  ;;  %v3358_v38 = vpop.permute.xlu0 %3357 }
 0x41f   : > { %v3318_v24 = vrot.slane %v3311_v2, %v5641_v62  ;;  %v3361_v32 = vsel %vm2306_vm7, %v4271_v52, %v3358_v38 }
 0x420   : > { %v3278_v9 = vcombine.high %v3277_v58, %v3277_v58  ;;  %v3285_v53 = vrot.slane %v3277_v58, %v5641_v62  ;;  %v3364_v20 = vcombine.low %v3360_v40, %v3361_v32  ;;  %v3405_v29 = vcombine.high %v3360_v40, %v3361_v32 }
 0x421   : > { %v3319_v18 = vcombine.high %v3318_v24, %v3318_v24  ;;  %v3326_v35 = vrot.slane %v3318_v24, %v5641_v62 }
 0x422   : > { %v3292_v8 = vrot.slane %v3278_v9, %v5641_v62  ;;  %v3293_v10 = vcombine.high %v3285_v53, %v3285_v53  ;;  %3749 = vst.msk [vmem:[%s5656_s12 + $0x4] ss:$8 sm:$0x3] %vm5648_vm8, %v3285_v53  ;;  %v3371_v39 = vrot.slane %v3364_v20, %v5641_v62  ;;  %v3412_v55 = vrot.slane %v3405_v29, %v5641_v62 }
 0x423   : > { %v3333_v57 = vrot.slane %v3319_v18, %v5641_v62  ;;  %v3334_v44 = vcombine.high %v3326_v35, %v3326_v35  ;;  %3753 = vst.msk [vmem:[%s5656_s12 + $0x5] ss:$8 sm:$0x3] %vm5648_vm8, %v3326_v35 }
 0x424   : > { %v3294_v27 = vcombine.high %v3292_v8, %v3292_v8  ;;  %3750 = vst.msk [vmem:[%s5656_s12 + $0x14] ss:$8 sm:$0x3] %vm5648_vm8, %v3292_v8  ;;  %3751 = vst.msk [vmem:[%s5656_s12 + $0x24] ss:$8 sm:$0x3] %vm5648_vm8, %v3293_v10  ;;  %v3372_v36 = vcombine.high %v3371_v39, %v3371_v39  ;;  %v3379_v5 = vrot.slane %v3371_v39, %v5641_v62 }
 0x425   : > { %v3335_v28 = vcombine.high %v3333_v57, %v3333_v57  ;;  %3754 = vst.msk [vmem:[%s5656_s12 + $0x15] ss:$8 sm:$0x3] %vm5648_vm8, %v3333_v57  ;;  %3755 = vst.msk [vmem:[%s5656_s12 + $0x25] ss:$8 sm:$0x3] %vm5648_vm8, %v3334_v44  ;;  %v3413_v37 = vcombine.high %v3412_v55, %v3412_v55  ;;  %v3420_v61 = vrot.slane %v3412_v55, %v5641_v62 }
 0x426   : > { %3752 = vst.msk [vmem:[%s5656_s12 + $0x34] ss:$8 sm:$0x3] %vm5648_vm8, %v3294_v27  ;;  %v3386_v25 = vrot.slane %v3372_v36, %v5641_v62  ;;  %v3387_v48 = vcombine.high %v3379_v5, %v3379_v5  ;;  %3757 = vst.msk [vmem:[%s5656_s12 + $0x6] ss:$8 sm:$0x3] %vm5648_vm8, %v3379_v5 }
 0x427   : > { %3756 = vst.msk [vmem:[%s5656_s12 + $0x35] ss:$8 sm:$0x3] %vm5648_vm8, %v3335_v28  ;;  %v3427_v21 = vrot.slane %v3413_v37, %v5641_v62  ;;  %v3428_v19 = vcombine.high %v3420_v61, %v3420_v61  ;;  %3761 = vst.msk [vmem:[%s5656_s12 + $0x7] ss:$8 sm:$0x3] %vm5648_vm8, %v3420_v61 }
 0x428   : > { %v3388_v41 = vcombine.high %v3386_v25, %v3386_v25  ;;  %3758 = vst.msk [vmem:[%s5656_s12 + $0x16] ss:$8 sm:$0x3] %vm5648_vm8, %v3386_v25  ;;  %3759 = vst.msk [vmem:[%s5656_s12 + $0x26] ss:$8 sm:$0x3] %vm5648_vm8, %v3387_v48 }
 0x429   : > { %v3429_v22 = vcombine.high %v3427_v21, %v3427_v21  ;;  %3762 = vst.msk [vmem:[%s5656_s12 + $0x17] ss:$8 sm:$0x3] %vm5648_vm8, %v3427_v21  ;;  %3763 = vst.msk [vmem:[%s5656_s12 + $0x27] ss:$8 sm:$0x3] %vm5648_vm8, %v3428_v19 }
 0x42a   : > { %3760 = vst.msk [vmem:[%s5656_s12 + $0x36] ss:$8 sm:$0x3] %vm5648_vm8, %v3388_v41  ;;  %3452 = sbr.rel (!%p4484_p5) target bundleno = 1076 (0x434), region = 36 }
 0x42b   : > { %3764 = vst.msk [vmem:[%s5656_s12 + $0x37] ss:$8 sm:$0x3] %vm5648_vm8, %v3429_v22 }
 0x42e   : > { %v3470_v62 = vld [vmem:[%s5656_s12] sm:$0xff] (%p4484_p5)  ;;  %v3472_v3 = vld [vmem:[%s5656_s12 + $0x8] sm:$0xff] (%p4484_p5) }
 0x42f   : > { %3471 = vst [vmem:[%s3457_s22] sm:$0xff] %v3470_v62  ;;  %3473 = vst [vmem:[%s3457_s22 + $0x8] sm:$0xff] %v3472_v3 }
 0x430   : > { %v3474_v1 = vld [vmem:[%s5656_s12 + $0x10] sm:$0xff]  ;;  %v3476_v0 = vld [vmem:[%s5656_s12 + $0x18] sm:$0xff]  ;;  %v3478_v45 = vld [vmem:[%s5656_s12 + $0x20] sm:$0xff] }
 0x431   : > { %v3480_v17 = vld [vmem:[%s5656_s12 + $0x28] sm:$0xff]  ;;  %3475 = vst [vmem:[%s3457_s22 + $0x20] sm:$0xff] %v3474_v1  ;;  %3477 = vst [vmem:[%s3457_s22 + $0x28] sm:$0xff] %v3476_v0 }
 0x432   : > { %v3482_v59 = vld [vmem:[%s5656_s12 + $0x30] sm:$0xff]  ;;  %v3484_v51 = vld [vmem:[%s5656_s12 + $0x38] sm:$0xff]  ;;  %3479 = vst [vmem:[%s3457_s22 + $0x40] sm:$0xff] %v3478_v45  ;;  %3481 = vst [vmem:[%s3457_s22 + $0x48] sm:$0xff] %v3480_v17 }
 0x433   : > { %3483 = vst [vmem:[%s3457_s22 + $0x60] sm:$0xff] %v3482_v59  ;;  %3485 = vst [vmem:[%s3457_s22 + $0x68] sm:$0xff] %v3484_v51 }
 0x434 PF: > { %s13_s18 = sadd.s32 1, %s4411_s18   ;;  %s5822_s12 = smov %s4391_s13 }
 0x435   : > { %p10_p10 = scmp.ge.s32.totalorder %s13_s18, 6   ;;  %s5823_s13 = smov %s4495_s27 }
 0x436   : > { %s5824_s14 = smov %s4403_s16  ;;  %s5825_s15 = smov %s4407_s17 }
 0x437   : > { %s5826_s16 = smov %s5829_s19  ;;  %s5827_s17 = smov %s5833_s20 }
 0x438   :  { %12 = sbr.rel (!%p10_p10) target bundleno = 4 (0x4), region = 117 }

</bundles_post_ra>
